<compile_context>
chip_gen: v7x
topology: tpu7x:2x2x1
jax: 0.10.0
libtpu: 0.0.40
codegen_flags: <defaults>
</compile_context>

<pallas_src>
import jax
import jax.numpy as jnp
from jax.experimental import pallas as pl
from jax.experimental.pallas import tpu as pltpu

_BN_EPS = 1e-5


def _pick_tile(dim, candidates=(512, 256, 128)):
    """Largest candidate tile that divides `dim`; fall back to full extent."""
    for t in candidates:
        if dim % t == 0:
            return t
    return dim  # full-extent block is always legal (perf cliff only for odd dims)


# ----------------------------- Pallas kernel -----------------------------

def _mlp_fused_kernel(x_ref, w1_ref, g_ref, b_ref, w2_ref, bias_ref, o_ref):
    """One grid step = one hidden-channel tile of the whole MLP:

         a = x @ w1[:, tile]                (bf16 MXU, f32 accumulation)
         y = relu(batchnorm1d(a))           (training-mode batch stats; exact,
                                             full batch lives in the block)
         o += y @ w2[tile, :]               (accumulated into resident f32 output)

       The last step adds the layer-2 bias.
    """
    h = pl.program_id(0)

    @pl.when(h == 0)
    def _():
        o_ref[...] = jnp.zeros_like(o_ref)

    # Layer 1 partial: (B, K) @ (K, th) -> (B, th) f32.
    a = jnp.dot(x_ref[...], w1_ref[...], preferred_element_type=jnp.float32)

    # Training-mode BatchNorm1d over the batch (row) axis, per channel.
    mean = jnp.mean(a, axis=0, keepdims=True)
    var = jnp.mean(jnp.square(a - mean), axis=0, keepdims=True)
    y = (a - mean) * jax.lax.rsqrt(var + _BN_EPS)
    y = y * g_ref[...] + b_ref[...]
    y = jnp.maximum(y, 0.0)

    # Layer 2 partial: (B, th) @ (th, N) accumulated into the resident output.
    o_ref[...] += jnp.dot(y.astype(w2_ref.dtype), w2_ref[...],
                          preferred_element_type=jnp.float32)

    @pl.when(h == pl.num_programs(0) - 1)
    def _():
        o_ref[...] += bias_ref[...]


# ----------------------------- wrapper -----------------------------

def mlp_forward(x_bf16, p):
    """Fused Linear(no bias) -> BatchNorm1d -> ReLU -> Linear(bias) in one pallas_call.

    x_bf16: (B, in_dim) bf16.  Returns (B, out_dim) f32.
    """
    bsz, in_dim = x_bf16.shape
    in_dim2, hidden = p['w1'].shape
    assert in_dim == in_dim2
    out_dim = p['w2'].shape[1]

    th = _pick_tile(hidden)
    grid = (hidden // th,)

    # Explicit working-set estimate (bytes): resident x + double-buffered hidden
    # tiles of w1/w2 + BN params + resident f32 output.  Raise the scoped VMEM
    # limit accordingly (v5e default is only 16 MiB).
    est = (bsz * in_dim * 2                 # x, resident bf16
           + 2 * in_dim * th * 2            # w1 tile, double-buffered bf16
           + 2 * th * out_dim * 2           # w2 tile, double-buffered bf16
           + 2 * 2 * th * 4                 # gamma/beta tiles, double-buffered f32
           + 2 * out_dim * 4                # bias, f32
           + bsz * out_dim * 4)             # resident output accumulator, f32
    vmem_limit = int(min(100 * 2**20, max(16 * 2**20, 2 * est)))

    cost = pl.CostEstimate(
        flops=2 * bsz * in_dim * hidden + 2 * bsz * hidden * out_dim,
        transcendentals=0,
        bytes_accessed=(2 * bsz * in_dim + 2 * in_dim * hidden
                        + 2 * hidden * out_dim + 8 * hidden
                        + 4 * out_dim + 4 * bsz * out_dim))

    return pl.pallas_call(
        _mlp_fused_kernel,
        out_shape=jax.ShapeDtypeStruct((bsz, out_dim), jnp.float32),
        grid_spec=pltpu.PrefetchScalarGridSpec(
            num_scalar_prefetch=0,
            grid=grid,
            in_specs=[
                pl.BlockSpec((bsz, in_dim), lambda h: (0, 0)),   # x: VMEM-resident, DMA'd once
                pl.BlockSpec((in_dim, th), lambda h: (0, h)),    # w1 hidden tile (bf16)
                pl.BlockSpec((1, th), lambda h: (0, h)),         # BN gamma
                pl.BlockSpec((1, th), lambda h: (0, h)),         # BN beta
                pl.BlockSpec((th, out_dim), lambda h: (h, 0)),   # w2 hidden tile (bf16)
                pl.BlockSpec((1, out_dim), lambda h: (0, 0)),    # layer-2 bias
            ],
            out_specs=pl.BlockSpec((bsz, out_dim), lambda h: (0, 0)),  # resident accumulator
        ),
        compiler_params=pltpu.CompilerParams(
            dimension_semantics=("arbitrary",),
            vmem_limit_bytes=vmem_limit),
        cost_estimate=cost,
    )(x_bf16, p['w1'], p['bn_g'], p['bn_b'], p['w2'], p['b2'])


# ----------------------------- model forward -----------------------------

def siamese_arm_forward(x, params):
    # TODO(synk): `encoder` is an externally injected nn.Module (default None) with no
    # definition in this module; treated as identity on pre-extracted (B, input_dim) features.
    y = x
    z = mlp_forward(y.astype(jnp.bfloat16), params['projector'])
    h = mlp_forward(z.astype(jnp.bfloat16), params['predictor'])
    return y, z, h


# ----------------------------- pure-JAX reference -----------------------------

def _mlp_reference(x, p):
    a = jnp.dot(x.astype(jnp.bfloat16), p['w1'], preferred_element_type=jnp.float32)
    mean = jnp.mean(a, axis=0, keepdims=True)
    var = jnp.mean(jnp.square(a - mean), axis=0, keepdims=True)
    y = (a - mean) * jax.lax.rsqrt(var + _BN_EPS) * p['bn_g'] + p['bn_b']
    y = jnp.maximum(y, 0.0)
    return jnp.dot(y.astype(jnp.bfloat16), p['w2'],
                   preferred_element_type=jnp.float32) + p['b2']


def _reference_forward(x, params):
    z = _mlp_reference(x, params['projector'])
    h = _mlp_reference(z, params['predictor'])
    return x, z, h


# ----------------------------- deterministic init -----------------------------

class _KeyGen:
    def __init__(self, key):
        self._key = key

    def __call__(self):
        self._key, sub = jax.random.split(self._key)
        return sub


def _init_mlp(kg, input_dim, hidden, output_dim):
    def lin_bf16(cin, cout):
        bound = 1.0 / float(cin) ** 0.5
        w = jax.random.uniform(kg(), (cin, cout), jnp.float32, -bound, bound)
        return w.astype(jnp.bfloat16)   # weights resident in bf16 (cast once at init)

    bound2 = 1.0 / float(hidden) ** 0.5
    return {
        'w1': lin_bf16(input_dim, hidden),                        # Linear, bias=False
        'bn_g': jnp.ones((1, hidden), jnp.float32),
        'bn_b': jnp.zeros((1, hidden), jnp.float32),
        'w2': lin_bf16(hidden, output_dim),                       # Linear, bias=True
        'b2': jax.random.uniform(kg(), (1, output_dim), jnp.float32, -bound2, bound2),
    }


def init_params(key, input_dim, hidden, output_dim):
    kg = _KeyGen(key)
    return {
        'projector': _init_mlp(kg, input_dim, hidden, output_dim),
        'predictor': _init_mlp(kg, output_dim, hidden, output_dim),
    }


# ----------------------------- main -----------------------------

if __name__ == "__main__":
    key = jax.random.PRNGKey(0)
    kx, kp = jax.random.split(key)

    # Small shapes consistent with the module (defaults 2048/4096/256, scaled down).
    # HIDDEN=1024 with th=512 exercises the multi-step accumulation/epilogue path.
    B, INPUT_DIM, HIDDEN, OUT_DIM = 8, 256, 1024, 128

    x = jax.random.normal(kx, (B, INPUT_DIM), jnp.float32)   # features fed to the arm
    params = init_params(kp, INPUT_DIM, HIDDEN, OUT_DIM)

    fwd = jax.jit(siamese_arm_forward)
    y, z, h = jax.block_until_ready(fwd(x, params))

    assert y.shape == (B, INPUT_DIM)
    assert z.shape == (B, OUT_DIM)
    assert h.shape == (B, OUT_DIM)
    assert bool(jnp.isfinite(z).all()) and bool(jnp.isfinite(h).all())

    # Tolerance check vs. a pure-JAX reference using the same bf16 weights.
    y_r, z_r, h_r = _reference_forward(x, params)
    assert bool(jnp.allclose(z, z_r, rtol=1e-2, atol=1e-2)), "projector mismatch"
    assert bool(jnp.allclose(h, h_r, rtol=1e-2, atol=1e-2)), "predictor mismatch"

    print("KERNEL_OK")
</pallas_src>

<mosaic_0001>
module attributes {stable_mosaic.version = 11 : i64} {
  func.func @_mlp_fused_kernel(%arg0: i32, %arg1: memref<8x256xbf16, #tpu.memory_space<vmem>>, %arg2: memref<256x512xbf16, #tpu.memory_space<vmem>>, %arg3: memref<1x512xf32, #tpu.memory_space<vmem>>, %arg4: memref<1x512xf32, #tpu.memory_space<vmem>>, %arg5: memref<512x128xbf16, #tpu.memory_space<vmem>>, %arg6: memref<1x128xf32, #tpu.memory_space<vmem>>, %arg7: memref<8x128xf32, #tpu.memory_space<vmem>>) attributes {dimension_semantics = [#tpu.dimension_semantics<arbitrary>], iteration_bounds = array<i64: 2>, scalar_prefetch = 0 : i64, scratch_operands = 0 : i64, tpu.core_type = #tpu.core_type<tc>, window_params = [{pipeline_mode = #tpu.pipeline_mode<synchronous>, transform_indices = @transform_0, window_bounds = array<i64: 8, 256>}, {transform_indices = @transform_1, window_bounds = array<i64: 256, 512>}, {transform_indices = @transform_2, window_bounds = array<i64: 1, 512>}, {transform_indices = @transform_3, window_bounds = array<i64: 1, 512>}, {transform_indices = @transform_4, window_bounds = array<i64: 512, 128>}, {pipeline_mode = #tpu.pipeline_mode<synchronous>, transform_indices = @transform_5, window_bounds = array<i64: 1, 128>}, {pipeline_mode = #tpu.pipeline_mode<synchronous>, transform_indices = @transform_6, window_bounds = array<i64: 8, 128>}]} {
    %c0_i32 = arith.constant 0 : i32
    %0 = arith.cmpi eq, %arg0, %c0_i32 : i32
    %1 = arith.extui %0 : i1 to i32
    %c0_i32_0 = arith.constant 0 : i32
    %2 = arith.cmpi ne, %1, %c0_i32_0 : i32
    scf.if %2 {
      %cst_22 = arith.constant 0.000000e+00 : f32
      %41 = vector.broadcast %cst_22 : f32 to vector<8x128xf32>
      %c0_23 = arith.constant 0 : index
      %c0_24 = arith.constant 0 : index
      %42 = vector.load %arg7[%c0_23, %c0_24] : memref<8x128xf32, #tpu.memory_space<vmem>>, vector<8x128xf32>
      tpu.vector_store %arg7[%c0_23, %c0_24], %41 {strides = array<i32>} : memref<8x128xf32, #tpu.memory_space<vmem>>, vector<8x128xf32>,
    } else {
    }
    %c0 = arith.constant 0 : index
    %c0_1 = arith.constant 0 : index
    %3 = vector.load %arg1[%c0, %c0_1] : memref<8x256xbf16, #tpu.memory_space<vmem>>, vector<8x256xbf16>
    %c0_2 = arith.constant 0 : index
    %c0_3 = arith.constant 0 : index
    %4 = vector.load %arg2[%c0_2, %c0_3] : memref<256x512xbf16, #tpu.memory_space<vmem>>, vector<256x512xbf16>
    %cst = arith.constant dense<0.000000e+00> : vector<8x512xf32>
    %5 = tpu.matmul %3, %4, %cst {dimension_numbers = #tpu.dot_dimension_numbers<[1], [0], [0], [1], [0, 0, 1, 1], [], []>} : vector<8x256xbf16>, vector<256x512xbf16>, vector<8x512xf32> -> vector<8x512xf32>
    %cst_4 = arith.constant dense<0.000000e+00> : vector<512xf32>
    %6 = vector.multi_reduction <add>, %5, %cst_4 [0] : vector<8x512xf32> to vector<512xf32>
    %7 = vector.shape_cast %6 : vector<512xf32> to vector<1x512xf32>
    %cst_5 = arith.constant 8.000000e+00 : f32
    %8 = vector.broadcast %cst_5 : f32 to vector<1x512xf32>
    %9 = arith.divf %7, %8 : vector<1x512xf32>
    %10 = vector.broadcast %9 : vector<1x512xf32> to vector<8x512xf32>
    %11 = arith.subf %5, %10 : vector<8x512xf32>
    %12 = arith.mulf %11, %11 : vector<8x512xf32>
    %cst_6 = arith.constant dense<0.000000e+00> : vector<512xf32>
    %13 = vector.multi_reduction <add>, %12, %cst_6 [0] : vector<8x512xf32> to vector<512xf32>
    %14 = vector.shape_cast %13 : vector<512xf32> to vector<1x512xf32>
    %cst_7 = arith.constant 8.000000e+00 : f32
    %15 = vector.broadcast %cst_7 : f32 to vector<1x512xf32>
    %16 = arith.divf %14, %15 : vector<1x512xf32>
    %17 = vector.broadcast %9 : vector<1x512xf32> to vector<8x512xf32>
    %18 = arith.subf %5, %17 : vector<8x512xf32>
    %cst_8 = arith.constant 9.99999974E-6 : f32
    %19 = vector.broadcast %cst_8 : f32 to vector<1x512xf32>
    %20 = arith.addf %16, %19 : vector<1x512xf32>
    %21 = math.rsqrt %20 : vector<1x512xf32>
    %22 = vector.broadcast %21 : vector<1x512xf32> to vector<8x512xf32>
    %23 = arith.mulf %18, %22 : vector<8x512xf32>
    %c0_9 = arith.constant 0 : index
    %c0_10 = arith.constant 0 : index
    %24 = vector.load %arg3[%c0_9, %c0_10] : memref<1x512xf32, #tpu.memory_space<vmem>>, vector<1x512xf32>
    %25 = vector.broadcast %24 : vector<1x512xf32> to vector<8x512xf32>
    %26 = arith.mulf %23, %25 : vector<8x512xf32>
    %c0_11 = arith.constant 0 : index
    %c0_12 = arith.constant 0 : index
    %27 = vector.load %arg4[%c0_11, %c0_12] : memref<1x512xf32, #tpu.memory_space<vmem>>, vector<1x512xf32>
    %28 = vector.broadcast %27 : vector<1x512xf32> to vector<8x512xf32>
    %29 = arith.addf %26, %28 : vector<8x512xf32>
    %cst_13 = arith.constant 0.000000e+00 : f32
    %30 = vector.broadcast %cst_13 : f32 to vector<8x512xf32>
    %31 = arith.maximumf %29, %30 : vector<8x512xf32>
    %c0_14 = arith.constant 0 : index
    %c0_15 = arith.constant 0 : index
    %32 = vector.load %arg7[%c0_14, %c0_15] : memref<8x128xf32, #tpu.memory_space<vmem>>, vector<8x128xf32>
    %33 = arith.truncf %31 : vector<8x512xf32> to vector<8x512xbf16>
    %c0_16 = arith.constant 0 : index
    %c0_17 = arith.constant 0 : index
    %34 = vector.load %arg5[%c0_16, %c0_17] : memref<512x128xbf16, #tpu.memory_space<vmem>>, vector<512x128xbf16>
    %cst_18 = arith.constant dense<0.000000e+00> : vector<8x128xf32>
    %35 = tpu.matmul %33, %34, %cst_18 {dimension_numbers = #tpu.dot_dimension_numbers<[1], [0], [0], [1], [0, 0, 1, 1], [], []>} : vector<8x512xbf16>, vector<512x128xbf16>, vector<8x128xf32> -> vector<8x128xf32>
    %36 = arith.addf %32, %35 : vector<8x128xf32>
    %c0_19 = arith.constant 0 : index
    %c0_20 = arith.constant 0 : index
    %37 = vector.load %arg7[%c0_19, %c0_20] : memref<8x128xf32, #tpu.memory_space<vmem>>, vector<8x128xf32>
    tpu.vector_store %arg7[%c0_19, %c0_20], %36 {strides = array<i32>} : memref<8x128xf32, #tpu.memory_space<vmem>>, vector<8x128xf32>,
    %c1_i32 = arith.constant 1 : i32
    %38 = arith.cmpi eq, %arg0, %c1_i32 : i32
    %39 = arith.extui %38 : i1 to i32
    %c0_i32_21 = arith.constant 0 : i32
    %40 = arith.cmpi ne, %39, %c0_i32_21 : i32
    scf.if %40 {
      %c0_22 = arith.constant 0 : index
      %c0_23 = arith.constant 0 : index
      %41 = vector.load %arg7[%c0_22, %c0_23] : memref<8x128xf32, #tpu.memory_space<vmem>>, vector<8x128xf32>
      %c0_24 = arith.constant 0 : index
      %c0_25 = arith.constant 0 : index
      %42 = vector.load %arg6[%c0_24, %c0_25] : memref<1x128xf32, #tpu.memory_space<vmem>>, vector<1x128xf32>
      %43 = vector.broadcast %42 : vector<1x128xf32> to vector<8x128xf32>
      %44 = arith.addf %41, %43 : vector<8x128xf32>
      %c0_26 = arith.constant 0 : index
      %c0_27 = arith.constant 0 : index
      %45 = vector.load %arg7[%c0_26, %c0_27] : memref<8x128xf32, #tpu.memory_space<vmem>>, vector<8x128xf32>
      tpu.vector_store %arg7[%c0_26, %c0_27], %44 {strides = array<i32>} : memref<8x128xf32, #tpu.memory_space<vmem>>, vector<8x128xf32>,
    } else {
    }
    return
  }
  func.func @transform_0(%arg0: i32) -> (i32, i32) {
    %c0_i32 = arith.constant 0 : i32
    %c0_i32_0 = arith.constant 0 : i32
    %c0_i32_1 = arith.constant 0 : i32
    return %c0_i32, %c0_i32_0 : i32, i32
  }
  func.func @transform_1(%arg0: i32) -> (i32, i32) {
    %c0_i32 = arith.constant 0 : i32
    %c0_i32_0 = arith.constant 0 : i32
    return %c0_i32, %arg0 : i32, i32
  }
  func.func @transform_2(%arg0: i32) -> (i32, i32) {
    %c0_i32 = arith.constant 0 : i32
    %c0_i32_0 = arith.constant 0 : i32
    return %c0_i32, %arg0 : i32, i32
  }
  func.func @transform_3(%arg0: i32) -> (i32, i32) {
    %c0_i32 = arith.constant 0 : i32
    %c0_i32_0 = arith.constant 0 : i32
    return %c0_i32, %arg0 : i32, i32
  }
  func.func @transform_4(%arg0: i32) -> (i32, i32) {
    %c0_i32 = arith.constant 0 : i32
    %c0_i32_0 = arith.constant 0 : i32
    return %arg0, %c0_i32 : i32, i32
  }
  func.func @transform_5(%arg0: i32) -> (i32, i32) {
    %c0_i32 = arith.constant 0 : i32
    %c0_i32_0 = arith.constant 0 : i32
    %c0_i32_1 = arith.constant 0 : i32
    return %c0_i32, %c0_i32_0 : i32, i32
  }
  func.func @transform_6(%arg0: i32) -> (i32, i32) {
    %c0_i32 = arith.constant 0 : i32
    %c0_i32_0 = arith.constant 0 : i32
    %c0_i32_1 = arith.constant 0 : i32
    return %c0_i32, %c0_i32_0 : i32, i32
  }
}

module attributes {stable_mosaic.version = 11 : i64} {
  func.func @_mlp_fused_kernel(%arg0: i32, %arg1: memref<8x128xbf16, #tpu.memory_space<vmem>>, %arg2: memref<128x512xbf16, #tpu.memory_space<vmem>>, %arg3: memref<1x512xf32, #tpu.memory_space<vmem>>, %arg4: memref<1x512xf32, #tpu.memory_space<vmem>>, %arg5: memref<512x128xbf16, #tpu.memory_space<vmem>>, %arg6: memref<1x128xf32, #tpu.memory_space<vmem>>, %arg7: memref<8x128xf32, #tpu.memory_space<vmem>>) attributes {dimension_semantics = [#tpu.dimension_semantics<arbitrary>], iteration_bounds = array<i64: 2>, scalar_prefetch = 0 : i64, scratch_operands = 0 : i64, tpu.core_type = #tpu.core_type<tc>, window_params = [{pipeline_mode = #tpu.pipeline_mode<synchronous>, transform_indices = @transform_0, window_bounds = array<i64: 8, 128>}, {transform_indices = @transform_1, window_bounds = array<i64: 128, 512>}, {transform_indices = @transform_2, window_bounds = array<i64: 1, 512>}, {transform_indices = @transform_3, window_bounds = array<i64: 1, 512>}, {transform_indices = @transform_4, window_bounds = array<i64: 512, 128>}, {pipeline_mode = #tpu.pipeline_mode<synchronous>, transform_indices = @transform_5, window_bounds = array<i64: 1, 128>}, {pipeline_mode = #tpu.pipeline_mode<synchronous>, transform_indices = @transform_6, window_bounds = array<i64: 8, 128>}]} {
    %c0_i32 = arith.constant 0 : i32
    %0 = arith.cmpi eq, %arg0, %c0_i32 : i32
    %1 = arith.extui %0 : i1 to i32
    %c0_i32_0 = arith.constant 0 : i32
    %2 = arith.cmpi ne, %1, %c0_i32_0 : i32
    scf.if %2 {
      %cst_22 = arith.constant 0.000000e+00 : f32
      %41 = vector.broadcast %cst_22 : f32 to vector<8x128xf32>
      %c0_23 = arith.constant 0 : index
      %c0_24 = arith.constant 0 : index
      %42 = vector.load %arg7[%c0_23, %c0_24] : memref<8x128xf32, #tpu.memory_space<vmem>>, vector<8x128xf32>
      tpu.vector_store %arg7[%c0_23, %c0_24], %41 {strides = array<i32>} : memref<8x128xf32, #tpu.memory_space<vmem>>, vector<8x128xf32>,
    } else {
    }
    %c0 = arith.constant 0 : index
    %c0_1 = arith.constant 0 : index
    %3 = vector.load %arg1[%c0, %c0_1] : memref<8x128xbf16, #tpu.memory_space<vmem>>, vector<8x128xbf16>
    %c0_2 = arith.constant 0 : index
    %c0_3 = arith.constant 0 : index
    %4 = vector.load %arg2[%c0_2, %c0_3] : memref<128x512xbf16, #tpu.memory_space<vmem>>, vector<128x512xbf16>
    %cst = arith.constant dense<0.000000e+00> : vector<8x512xf32>
    %5 = tpu.matmul %3, %4, %cst {dimension_numbers = #tpu.dot_dimension_numbers<[1], [0], [0], [1], [0, 0, 1, 1], [], []>} : vector<8x128xbf16>, vector<128x512xbf16>, vector<8x512xf32> -> vector<8x512xf32>
    %cst_4 = arith.constant dense<0.000000e+00> : vector<512xf32>
    %6 = vector.multi_reduction <add>, %5, %cst_4 [0] : vector<8x512xf32> to vector<512xf32>
    %7 = vector.shape_cast %6 : vector<512xf32> to vector<1x512xf32>
    %cst_5 = arith.constant 8.000000e+00 : f32
    %8 = vector.broadcast %cst_5 : f32 to vector<1x512xf32>
    %9 = arith.divf %7, %8 : vector<1x512xf32>
    %10 = vector.broadcast %9 : vector<1x512xf32> to vector<8x512xf32>
    %11 = arith.subf %5, %10 : vector<8x512xf32>
    %12 = arith.mulf %11, %11 : vector<8x512xf32>
    %cst_6 = arith.constant dense<0.000000e+00> : vector<512xf32>
    %13 = vector.multi_reduction <add>, %12, %cst_6 [0] : vector<8x512xf32> to vector<512xf32>
    %14 = vector.shape_cast %13 : vector<512xf32> to vector<1x512xf32>
    %cst_7 = arith.constant 8.000000e+00 : f32
    %15 = vector.broadcast %cst_7 : f32 to vector<1x512xf32>
    %16 = arith.divf %14, %15 : vector<1x512xf32>
    %17 = vector.broadcast %9 : vector<1x512xf32> to vector<8x512xf32>
    %18 = arith.subf %5, %17 : vector<8x512xf32>
    %cst_8 = arith.constant 9.99999974E-6 : f32
    %19 = vector.broadcast %cst_8 : f32 to vector<1x512xf32>
    %20 = arith.addf %16, %19 : vector<1x512xf32>
    %21 = math.rsqrt %20 : vector<1x512xf32>
    %22 = vector.broadcast %21 : vector<1x512xf32> to vector<8x512xf32>
    %23 = arith.mulf %18, %22 : vector<8x512xf32>
    %c0_9 = arith.constant 0 : index
    %c0_10 = arith.constant 0 : index
    %24 = vector.load %arg3[%c0_9, %c0_10] : memref<1x512xf32, #tpu.memory_space<vmem>>, vector<1x512xf32>
    %25 = vector.broadcast %24 : vector<1x512xf32> to vector<8x512xf32>
    %26 = arith.mulf %23, %25 : vector<8x512xf32>
    %c0_11 = arith.constant 0 : index
    %c0_12 = arith.constant 0 : index
    %27 = vector.load %arg4[%c0_11, %c0_12] : memref<1x512xf32, #tpu.memory_space<vmem>>, vector<1x512xf32>
    %28 = vector.broadcast %27 : vector<1x512xf32> to vector<8x512xf32>
    %29 = arith.addf %26, %28 : vector<8x512xf32>
    %cst_13 = arith.constant 0.000000e+00 : f32
    %30 = vector.broadcast %cst_13 : f32 to vector<8x512xf32>
    %31 = arith.maximumf %29, %30 : vector<8x512xf32>
    %c0_14 = arith.constant 0 : index
    %c0_15 = arith.constant 0 : index
    %32 = vector.load %arg7[%c0_14, %c0_15] : memref<8x128xf32, #tpu.memory_space<vmem>>, vector<8x128xf32>
    %33 = arith.truncf %31 : vector<8x512xf32> to vector<8x512xbf16>
    %c0_16 = arith.constant 0 : index
    %c0_17 = arith.constant 0 : index
    %34 = vector.load %arg5[%c0_16, %c0_17] : memref<512x128xbf16, #tpu.memory_space<vmem>>, vector<512x128xbf16>
    %cst_18 = arith.constant dense<0.000000e+00> : vector<8x128xf32>
    %35 = tpu.matmul %33, %34, %cst_18 {dimension_numbers = #tpu.dot_dimension_numbers<[1], [0], [0], [1], [0, 0, 1, 1], [], []>} : vector<8x512xbf16>, vector<512x128xbf16>, vector<8x128xf32> -> vector<8x128xf32>
    %36 = arith.addf %32, %35 : vector<8x128xf32>
    %c0_19 = arith.constant 0 : index
    %c0_20 = arith.constant 0 : index
    %37 = vector.load %arg7[%c0_19, %c0_20] : memref<8x128xf32, #tpu.memory_space<vmem>>, vector<8x128xf32>
    tpu.vector_store %arg7[%c0_19, %c0_20], %36 {strides = array<i32>} : memref<8x128xf32, #tpu.memory_space<vmem>>, vector<8x128xf32>,
    %c1_i32 = arith.constant 1 : i32
    %38 = arith.cmpi eq, %arg0, %c1_i32 : i32
    %39 = arith.extui %38 : i1 to i32
    %c0_i32_21 = arith.constant 0 : i32
    %40 = arith.cmpi ne, %39, %c0_i32_21 : i32
    scf.if %40 {
      %c0_22 = arith.constant 0 : index
      %c0_23 = arith.constant 0 : index
      %41 = vector.load %arg7[%c0_22, %c0_23] : memref<8x128xf32, #tpu.memory_space<vmem>>, vector<8x128xf32>
      %c0_24 = arith.constant 0 : index
      %c0_25 = arith.constant 0 : index
      %42 = vector.load %arg6[%c0_24, %c0_25] : memref<1x128xf32, #tpu.memory_space<vmem>>, vector<1x128xf32>
      %43 = vector.broadcast %42 : vector<1x128xf32> to vector<8x128xf32>
      %44 = arith.addf %41, %43 : vector<8x128xf32>
      %c0_26 = arith.constant 0 : index
      %c0_27 = arith.constant 0 : index
      %45 = vector.load %arg7[%c0_26, %c0_27] : memref<8x128xf32, #tpu.memory_space<vmem>>, vector<8x128xf32>
      tpu.vector_store %arg7[%c0_26, %c0_27], %44 {strides = array<i32>} : memref<8x128xf32, #tpu.memory_space<vmem>>, vector<8x128xf32>,
    } else {
    }
    return
  }
  func.func @transform_0(%arg0: i32) -> (i32, i32) {
    %c0_i32 = arith.constant 0 : i32
    %c0_i32_0 = arith.constant 0 : i32
    %c0_i32_1 = arith.constant 0 : i32
    return %c0_i32, %c0_i32_0 : i32, i32
  }
  func.func @transform_1(%arg0: i32) -> (i32, i32) {
    %c0_i32 = arith.constant 0 : i32
    %c0_i32_0 = arith.constant 0 : i32
    return %c0_i32, %arg0 : i32, i32
  }
  func.func @transform_2(%arg0: i32) -> (i32, i32) {
    %c0_i32 = arith.constant 0 : i32
    %c0_i32_0 = arith.constant 0 : i32
    return %c0_i32, %arg0 : i32, i32
  }
  func.func @transform_3(%arg0: i32) -> (i32, i32) {
    %c0_i32 = arith.constant 0 : i32
    %c0_i32_0 = arith.constant 0 : i32
    return %c0_i32, %arg0 : i32, i32
  }
  func.func @transform_4(%arg0: i32) -> (i32, i32) {
    %c0_i32 = arith.constant 0 : i32
    %c0_i32_0 = arith.constant 0 : i32
    return %arg0, %c0_i32 : i32, i32
  }
  func.func @transform_5(%arg0: i32) -> (i32, i32) {
    %c0_i32 = arith.constant 0 : i32
    %c0_i32_0 = arith.constant 0 : i32
    %c0_i32_1 = arith.constant 0 : i32
    return %c0_i32, %c0_i32_0 : i32, i32
  }
  func.func @transform_6(%arg0: i32) -> (i32, i32) {
    %c0_i32 = arith.constant 0 : i32
    %c0_i32_0 = arith.constant 0 : i32
    %c0_i32_1 = arith.constant 0 : i32
    return %c0_i32, %c0_i32_0 : i32, i32
  }
}

</mosaic_0001>

<bundles_post_ra>
// kernel: siamese_arm_forward.2
= control target key start
LH: loop header
LB: loop body
LE: loop exit
PB: predicated region body
PF: predicated region fallthrough
CT: control target
= control target key end

     0   :  { %11 = vsyncpa [#allocation3], 0  ;;  %s2184_s0 = inlined_call_operand.vmem [shape: bf16[8,256], index: 0, kind: input, shape index: {}]   ;;  %s2185_s1 = inlined_call_operand.hbm [shape: bf16[256,1024], index: 1, kind: input, shape index: {}]   ;;  %s2186_s2 = inlined_call_operand.vmem [shape: f32[1,1024], index: 2, kind: input, shape index: {}]   ;;  %s2187_s3 = inlined_call_operand.vmem [shape: f32[1,1024], index: 3, kind: input, shape index: {}]   ;;  %s2188_s4 = inlined_call_operand.hbm [shape: bf16[1024,128], index: 4, kind: input, shape index: {}]   ;;  %s2189_s5 = inlined_call_operand.vmem [shape: f32[1,128], index: 5, kind: input, shape index: {}]   ;;  %s2190_s6 = inlined_call_operand.vmem [shape: f32[8,128], index: 6, kind: output, shape index: {}]  }
   0x1   :  { %13 = vsyncpa [#allocation3 + $0x1], 0 }
   0x2   :  { %14 = vsyncpa [#allocation5], 0 }
   0x3   :  { %16 = vsyncpa [#allocation5 + $0x1], 0  ;;  %s1881_s21 = smov 0   ;;  %s1883_s22 = smov 0  }
   0x4   :  { %s1885_s23 = smov 0   ;;  %s1887_s24 = smov 0  }
   0x5 LB: > { %s1900_s25 = sadd.s32 4294967295, %s1836_s24   ;;  %s1903_s26 = sadd.s32 1, %s1836_s24   ;;  %s1836_s24 = sphi %s1887_s24, %s2199_s24   ;;  %s1832_s23 = sphi %s1885_s23, %s2198_s23   ;;  %s1828_s22 = sphi %s1883_s22, %s2197_s22   ;;  %s1824_s21 = sphi %s1881_s21, %s2196_s21  }
   0x6   : > { %s47_s27 = ssub.s32 %s1836_s24, %s1903_s26  ;;  %s50_s28 = sadd.s32 1, %s1832_s23 }
   0x7   : > { %p48_p0 = scmp.eq.s32.totalorder %s47_s27, 0  ;;  %p57_p1 = scmp.ne.s32.totalorder %s1832_s23, %s1828_s22 }
   0x8   : > { %p58_p2 = scmp.eq.s32.totalorder %s1836_s24, 0  ;;  %p63_p3 = scmp.ne.s32.totalorder %s1828_s22, %s1824_s21 }
   0x9   : > { %s1913_s29 = scalar_select %p48_p0, %s1832_s23, %s50_s28  }
   0xa   : > { %p59_p4 = por %p58_p2, %p57_p1  ;;  %p64_p5 = scmp.eq.s32.totalorder %s1900_s25, 0 }
   0xb   : > { %p1561_p6 = scmp.lt.s32.totalorder %s1836_s24, 2  ;;  %s1922_s7 = sand.u32 1, %s1832_s23  }
   0xc   : > { %p1917_p7 = por %p64_p5, %p63_p3  ;;  %s1390_s8 = sshll.u32 %s1922_s7, 9 }
   0xd   : > { %s1504_s9 = sshll.u32 %s1836_s24, 8  ;;  %s217_s13 = scalar_lea.vmem [#allocation2], %s1390_s8 }
   0xe   : > { %s2192_s30 = scalar_select %p1917_p7, 1, 0 }
   0xf   : > { %s1929_s12 = scalar_lea.hbm %s2185_s1, %s1504_s9  ;;  %s224_s14 = sshll.u32 %s217_s13, 4  ;;  %s1931_s14 = int_to_ptr.vmem [resolvable:$true] %s224_s14 }
  0x10   : > { %p1933_p8 = pnand %p1561_p6, %p59_p4  ;;  %s214_s16 = scalar_lea.sflag [#allocation3], %s1922_s7 }
  0x11   : > { %s1738_s17 = scalar_lea.hbm %s1929_s12, 8192  ;;  %s1743_s20 = scalar_lea.hbm %s2185_s1, 16384 }
  0x12   : > { %p1739_p9 = scmp.ne.s32.totalorder %s1929_s12, %s1738_s17  ;;  %p1740_p10 = pneg %p1933_p8 }
  0x13   : > { %p1744_p13 = scmp.lt.u32.totalorder %s1929_s12, %s2185_s1  ;;  %p1745_p0 = scmp.lt.u32.totalorder %s1743_s20, %s1738_s17 }
  0x14   : > { %p1741_p11 = pnand %p1740_p10, %p1739_p9  ;;  %p1747_p2 = scmp.lt.u32.totalorder %s1738_s17, %s1929_s12 }
  0x15   : > { %p1746_p1 = por %p1745_p0, %p1744_p13 }
  0x16   : > { %p1742_p12 = pneg %p1741_p11 }
  0x17   : > { %p1748_p3 = por %p1747_p2, %p1746_p1 }
  0x19   : > { %p1749_p4 = pnand %p1748_p3, %p1742_p12 }
  0x1b   : > { %1752 = shalt.err (!%p1749_p4)
}
  0x1c   : > { %s1753_s28 = scalar_lea.vmem %s1931_s14, 8192  ;;  %s1838_s8 = smov [#allocation2]  }
  0x1d   : > { %p1754_p5 = scmp.ne.s32.totalorder %s1931_s14, %s1753_s28  ;;  %s1758_s9 = sshll.u32 %s1838_s8, 4  ;;  %s1759_s9 = int_to_ptr.vmem [resolvable:$false] %s1758_s9 }
  0x1e   : > { %s1760_s10 = scalar_lea.vmem %s1759_s9, 16384  ;;  %p1761_p11 = scmp.lt.s32.totalorder %s1931_s14, %s1759_s9 }
  0x1f   : > { %p1756_p6 = pnand %p1754_p5, %p1740_p10  ;;  %p1762_p13 = scmp.lt.s32.totalorder %s1760_s10, %s1753_s28 }
  0x21   : > { %p1757_p9 = pneg %p1756_p6  ;;  %p1763_p0 = por %p1762_p13, %p1761_p11 }
  0x23   : > { %p1764_p1 = pnand %p1763_p0, %p1757_p9 }
  0x25   : > { %1767 = shalt.err (!%p1764_p1)
}
  0x26   : > { %s1839_s11 = smov 512   ;;  %s1840_s13 = smov 256  }
  0x27   : > { %s1841_s17 = smov 16   ;;  %p1396_p12 = scmp.ge.s32.totalorder %s1836_s24, 1 }
  0x28   : > { %1557 = dma.hbm_to_vmem [thread:$0]  (!%p1933_p8), %s1929_s12, 8192, %s1931_s14, %s214_s16, %s1839_s11, %s1840_s13, %s1841_s17  }
  0x29   : > { %p269_p2 = scmp.lt.s32.totalorder %s1836_s24, 3  ;;  %s1393_s18 = sshll.u32 %s1922_s7, 8 }
  0x2a   : > { %s1505_s20 = sshll.u32 %s1836_s24, 12  ;;  %s254_s21 = scalar_lea.vmem [#allocation4], %s1393_s18 }
  0x2b   : > { %p1968_p3 = pnand %p1396_p12, %p269_p2  ;;  %s261_s27 = sshll.u32 %s254_s21, 4  ;;  %s1978_s27 = int_to_ptr.vmem [resolvable:$true] %s261_s27 }
  0x2c   : > { %s1976_s9 = scalar_lea.hbm %s2188_s4, %s1505_s20  ;;  %s251_s12 = scalar_lea.sflag [#allocation5], %s1922_s7 }
  0x2d   : > { %s1768_s14 = scalar_lea.hbm %s1976_s9, 4096  ;;  %s1773_s10 = scalar_lea.hbm %s2188_s4, 8192 }
  0x2e   : > { %p1769_p4 = scmp.ne.s32.totalorder %s1976_s9, %s1768_s14  ;;  %p1774_p9 = scmp.lt.u32.totalorder %s1976_s9, %s2188_s4 }
  0x2f   : > { %p1775_p11 = scmp.lt.u32.totalorder %s1773_s10, %s1768_s14  ;;  %p1777_p0 = scmp.lt.u32.totalorder %s1768_s14, %s1976_s9 }
  0x30   : > { %p1771_p5 = pnand %p1769_p4, %p1740_p10 }
  0x31   : > { %p1776_p13 = por %p1775_p11, %p1774_p9 }
  0x32   : > { %p1772_p6 = pneg %p1771_p5 }
  0x33   : > { %p1778_p1 = por %p1777_p0, %p1776_p13 }
  0x35   : > { %p1779_p12 = pnand %p1778_p1, %p1772_p6 }
  0x37   : > { %1782 = shalt.err (!%p1779_p12)
}
  0x38   : > { %s1783_s17 = scalar_lea.vmem %s1978_s27, 4096  ;;  %s1842_s18 = smov [#allocation4]  }
  0x39   : > { %p1784_p2 = scmp.ne.s32.totalorder %s1978_s27, %s1783_s17  ;;  %s1788_s20 = sshll.u32 %s1842_s18, 4  ;;  %s1789_s20 = int_to_ptr.vmem [resolvable:$false] %s1788_s20 }
  0x3a   : > { %s1790_s21 = scalar_lea.vmem %s1789_s20, 8192  ;;  %p1791_p7 = scmp.lt.s32.totalorder %s1978_s27, %s1789_s20 }
  0x3b   : > { %p1786_p4 = pnand %p1784_p2, %p1740_p10  ;;  %p1792_p9 = scmp.lt.s32.totalorder %s1790_s21, %s1783_s17 }
  0x3d   : > { %p1787_p5 = pneg %p1786_p4  ;;  %p1793_p11 = por %p1792_p9, %p1791_p7 }
  0x3f   : > { %p1794_p13 = pnand %p1793_p11, %p1787_p5 }
  0x41   : > { %1797 = shalt.err (!%p1794_p13)
}
  0x42   : > { %s1843_s28 = smov 64   ;;  %s1844_s8 = smov 4  }
  0x43   : > { %1560 = dma.hbm_to_vmem [thread:$0]  (!%p1933_p8), %s1976_s9, 4096, %s1978_s27, %s251_s12, %s1843_s28, %s1843_s28, %s1844_s8  }
  0x44   : > { %273 = sbr.rel (%p1968_p3) target bundleno = 654 (0x28e), region = 44  ;;  %s275_s14 = sand.u32 (!%p1968_p3), 1, %s1828_s22  }
  0x45   : > { %s1397_s24 = sshll.u32 (!%p1968_p3), %s275_s14, 9  ;;  %s276_s16 = scalar_lea.sflag (!%p1968_p3), [#allocation3], %s275_s14 }
  0x46   : > { %s2009_s10 = scalar_lea.vmem (!%p1968_p3), [#allocation2], %s1397_s24  ;;  %p2195_p7 = scmp.ne.s32.totalorder (!%p1968_p3), %s2192_s30, 0 }
  0x4b   : > { %1815 = dma.done.wait (%p2195_p7), %s276_s16, 8192  }
  0x4c   : > { %1817 = vsyncadd (%p2195_p7), %s276_s16, 4294959104  ;;  %s1398_s11 = sshll.u32 %s275_s14, 8  ;;  %s285_s15 = scalar_lea.sflag [#allocation5], %s275_s14 }
  0x4d   : > { %s2015_s7 = scalar_lea.vmem [#allocation4], %s1398_s11 }
  0x4e   : > { %1819 = dma.done.wait (%p2195_p7), %s285_s15, 4096  }
  0x4f   : > { %1821 = vsyncadd (%p2195_p7), %s285_s15, 4294963200  ;;  %s1399_s19 = sshll.u32 %s1900_s25, 2  ;;  %p1401_p10 = scmp.ne.s32.totalorder %s1900_s25, 0 }
  0x50   : > { %p327_p8 = scmp.lt.s32.totalorder %s1399_s19, 7  ;;  %v1845_v0 = vmov (!%p1401_p10), 0.0  }
  0x51   : > { %341 = sbr.rel (%p1401_p10) target bundleno = 88 (0x58), region = 56  ;;  %342 = vst [vmem:[%s2190_s6] sm:$0xff] (!%p1401_p10), %v1845_v0 }
  0x52   : > { %s2201_s19 = smov (!%p327_p8, %s1399_s19), 7 }
  0x53   : > { %s329_s12 = scalar_lea.vmem %s2186_s2, %s2201_s19  ;;  %s334_s18 = scalar_lea.vmem %s2187_s3, %s2201_s19 }
  0x58 PF: > { %v1600_v1 = vld [vmem:[%s2009_s10 + $0x4] ss:$16 sps:$4 sm:$0xff]   ;;  %v1602_v2 = vld [vmem:[%s2009_s10 + $0xc] ss:$16 sps:$4 sm:$0xff]   ;;  %v1604_v3 = vld [vmem:[%s2009_s10] ss:$16 sps:$4 sm:$0xff]  }
  0x59   : > { %735 = vmatprep.subr.bf16.mxu0 %v1600_v1  ;;  %v1605_v4 = vld [vmem:[%s2009_s10 + $0x8] ss:$16 sps:$4 sm:$0xff]   ;;  %776 = vmatprep.subr.bf16.mxu1 %v1602_v2  ;;  %v1606_v5 = vld [vmem:[%s2009_s10 + $0x24] ss:$16 sps:$4 sm:$0xff]   ;;  %v1608_v6 = vld [vmem:[%s2009_s10 + $0x2c] ss:$16 sps:$4 sm:$0xff]  }
  0x5a   : > { %736 = vmatpush1.bf16.msra.mxu0 %v1604_v3  ;;  %777 = vmatpush1.bf16.msra.mxu1 %v1605_v4  ;;  %v1610_v7 = vld [vmem:[%s2009_s10 + $0x20] ss:$16 sps:$4 sm:$0xff]   ;;  %v1611_v8 = vld [vmem:[%s2009_s10 + $0x28] ss:$16 sps:$4 sm:$0xff]   ;;  %v1612_v9 = vld [vmem:[%s2009_s10 + $0x44] ss:$16 sps:$4 sm:$0xff]  }
  0x5b   : > { %737 = vmatprep.subr.bf16.mxu0 %v1606_v5  ;;  %778 = vmatprep.subr.bf16.mxu1 %v1608_v6  ;;  %v1614_v10 = vld [vmem:[%s2009_s10 + $0x4c] ss:$16 sps:$4 sm:$0xff]   ;;  %v1616_v11 = vld [vmem:[%s2009_s10 + $0x40] ss:$16 sps:$4 sm:$0xff]   ;;  %v1617_v12 = vld [vmem:[%s2009_s10 + $0x48] ss:$16 sps:$4 sm:$0xff]  }
  0x5c   : > { %v1618_v13 = vld [vmem:[%s2009_s10 + $0x64] ss:$16 sps:$4 sm:$0xff]   ;;  %v1620_v14 = vld [vmem:[%s2009_s10 + $0x6c] ss:$16 sps:$4 sm:$0xff]   ;;  %v1622_v15 = vld [vmem:[%s2009_s10 + $0x60] ss:$16 sps:$4 sm:$0xff]  }
  0x5d   : > { %v1623_v16 = vld [vmem:[%s2009_s10 + $0x68] ss:$16 sps:$4 sm:$0xff]   ;;  %v1624_v17 = vld [vmem:[%s2009_s10 + $0x84] ss:$16 sps:$4 sm:$0xff]   ;;  %v1626_v18 = vld [vmem:[%s2009_s10 + $0x8c] ss:$16 sps:$4 sm:$0xff]  }
  0x5e   : > { %738 = vmatpush1.bf16.msra.mxu0 %v1610_v7  ;;  %779 = vmatpush1.bf16.msra.mxu1 %v1611_v8  ;;  %v1628_v19 = vld [vmem:[%s2009_s10 + $0x80] ss:$16 sps:$4 sm:$0xff]   ;;  %v1629_v20 = vld [vmem:[%s2009_s10 + $0x88] ss:$16 sps:$4 sm:$0xff]   ;;  %v1630_v21 = vld [vmem:[%s2009_s10 + $0xa4] ss:$16 sps:$4 sm:$0xff]  }
  0x5f   : > { %739 = vmatprep.subr.bf16.mxu0 %v1612_v9  ;;  %780 = vmatprep.subr.bf16.mxu1 %v1614_v10  ;;  %v1632_v22 = vld [vmem:[%s2009_s10 + $0xac] ss:$16 sps:$4 sm:$0xff]   ;;  %v1634_v23 = vld [vmem:[%s2009_s10 + $0xa0] ss:$16 sps:$4 sm:$0xff]   ;;  %v1635_v24 = vld [vmem:[%s2009_s10 + $0xa8] ss:$16 sps:$4 sm:$0xff]  }
  0x60   : > { %v1636_v25 = vld [vmem:[%s2009_s10 + $0xc4] ss:$16 sps:$4 sm:$0xff]   ;;  %v1638_v26 = vld [vmem:[%s2009_s10 + $0xcc] ss:$16 sps:$4 sm:$0xff]   ;;  %v1640_v27 = vld [vmem:[%s2009_s10 + $0xc0] ss:$16 sps:$4 sm:$0xff]  }
  0x61   : > { %v1641_v28 = vld [vmem:[%s2009_s10 + $0xc8] ss:$16 sps:$4 sm:$0xff]   ;;  %v1642_v29 = vld [vmem:[%s2009_s10 + $0xe4] ss:$16 sps:$4 sm:$0xff]   ;;  %v1644_v30 = vld [vmem:[%s2009_s10 + $0xec] ss:$16 sps:$4 sm:$0xff]  }
  0x62   : > { %740 = vmatpush1.bf16.msra.mxu0 %v1616_v11  ;;  %781 = vmatpush1.bf16.msra.mxu1 %v1617_v12  ;;  %v1646_v31 = vld [vmem:[%s2009_s10 + $0xe0] ss:$16 sps:$4 sm:$0xff]   ;;  %v1647_v32 = vld [vmem:[%s2009_s10 + $0xe8] ss:$16 sps:$4 sm:$0xff]   ;;  %v1648_v33 = vld [vmem:[%s2009_s10 + $0x104] ss:$16 sps:$4 sm:$0xff]  }
  0x63   : > { %741 = vmatprep.subr.bf16.mxu0 %v1618_v13  ;;  %782 = vmatprep.subr.bf16.mxu1 %v1620_v14  ;;  %v1650_v34 = vld [vmem:[%s2009_s10 + $0x10c] ss:$16 sps:$4 sm:$0xff]   ;;  %v1652_v35 = vld [vmem:[%s2009_s10 + $0x100] ss:$16 sps:$4 sm:$0xff]   ;;  %v1653_v36 = vld [vmem:[%s2009_s10 + $0x108] ss:$16 sps:$4 sm:$0xff]  }
  0x64   : > { %v1654_v37 = vld [vmem:[%s2009_s10 + $0x124] ss:$16 sps:$4 sm:$0xff]   ;;  %v1656_v38 = vld [vmem:[%s2009_s10 + $0x12c] ss:$16 sps:$4 sm:$0xff]   ;;  %v1658_v39 = vld [vmem:[%s2009_s10 + $0x120] ss:$16 sps:$4 sm:$0xff]  }
  0x65   : > { %v1659_v40 = vld [vmem:[%s2009_s10 + $0x128] ss:$16 sps:$4 sm:$0xff]   ;;  %v1660_v41 = vld [vmem:[%s2009_s10 + $0x144] ss:$16 sps:$4 sm:$0xff]   ;;  %v1662_v42 = vld [vmem:[%s2009_s10 + $0x14c] ss:$16 sps:$4 sm:$0xff]  }
  0x66   : > { %742 = vmatpush1.bf16.msra.mxu0 %v1622_v15  ;;  %783 = vmatpush1.bf16.msra.mxu1 %v1623_v16  ;;  %v1664_v43 = vld [vmem:[%s2009_s10 + $0x140] ss:$16 sps:$4 sm:$0xff]   ;;  %v1665_v44 = vld [vmem:[%s2009_s10 + $0x148] ss:$16 sps:$4 sm:$0xff]   ;;  %v1666_v45 = vld [vmem:[%s2009_s10 + $0x164] ss:$16 sps:$4 sm:$0xff]  }
  0x67   : > { %743 = vmatprep.subr.bf16.mxu0 %v1624_v17  ;;  %784 = vmatprep.subr.bf16.mxu1 %v1626_v18  ;;  %v1668_v46 = vld [vmem:[%s2009_s10 + $0x16c] ss:$16 sps:$4 sm:$0xff]   ;;  %v1670_v47 = vld [vmem:[%s2009_s10 + $0x160] ss:$16 sps:$4 sm:$0xff]   ;;  %v1671_v48 = vld [vmem:[%s2009_s10 + $0x168] ss:$16 sps:$4 sm:$0xff]  }
  0x68   : > { %v343_v49 = vld [vmem:[%s2184_s0] sm:$0xff]  ;;  %v1674_v51 = vld [vmem:[%s2009_s10 + $0x18c] ss:$16 sps:$4 sm:$0xff]   ;;  %v1677_v54 = vld [vmem:[%s2009_s10 + $0x188] ss:$16 sps:$4 sm:$0xff]   ;;  %p1500_p3 = scmp.ne.s32.totalorder %s1900_s25, 1 }
  0x69   : > { %v1672_v50 = vld [vmem:[%s2009_s10 + $0x184] ss:$16 sps:$4 sm:$0xff]   ;;  %v1403_v52 = vcombine.high %v343_v49, %v343_v49  ;;  %v1676_v53 = vld [vmem:[%s2009_s10 + $0x180] ss:$16 sps:$4 sm:$0xff]   ;;  %v1680_v56 = vld [vmem:[%s2009_s10 + $0x1ac] ss:$16 sps:$4 sm:$0xff]   ;;  %v1402_v3 = vcombine.low %v343_v49, %v343_v49 }
  0x6a   : > { %744 = vmatpush1.bf16.msra.mxu0 %v1628_v19  ;;  %785 = vmatpush1.bf16.msra.mxu1 %v1629_v20  ;;  %v1678_v55 = vld [vmem:[%s2009_s10 + $0x1a4] ss:$16 sps:$4 sm:$0xff]   ;;  %v1682_v57 = vld [vmem:[%s2009_s10 + $0x1a0] ss:$16 sps:$4 sm:$0xff]   ;;  %v1683_v58 = vld [vmem:[%s2009_s10 + $0x1a8] ss:$16 sps:$4 sm:$0xff]  }
  0x6b   : > { %745 = vmatprep.subr.bf16.mxu0 %v1630_v21  ;;  %786 = vmatprep.subr.bf16.mxu1 %v1632_v22  ;;  %v1684_v59 = vld [vmem:[%s2009_s10 + $0x1c4] ss:$16 sps:$4 sm:$0xff]   ;;  %v1686_v60 = vld [vmem:[%s2009_s10 + $0x1cc] ss:$16 sps:$4 sm:$0xff]   ;;  %v1688_v61 = vld [vmem:[%s2009_s10 + $0x1c0] ss:$16 sps:$4 sm:$0xff]  }
  0x6c   : > { %767 = vmatprep.mubr.bf16.mxu0 %v1403_v52  ;;  %808 = vmatprep.mubr.bf16.mxu1 %v1403_v52  ;;  %v1689_v62 = vld [vmem:[%s2009_s10 + $0x1c8] ss:$16 sps:$4 sm:$0xff]   ;;  %v1690_v63 = vld [vmem:[%s2009_s10 + $0x1e4] ss:$16 sps:$4 sm:$0xff]   ;;  %v1692_v0 = vld [vmem:[%s2009_s10 + $0x1ec] ss:$16 sps:$4 sm:$0xff]  }
  0x6d   : > { %v1694_v1 = vld [vmem:[%s2009_s10 + $0x1e0] ss:$16 sps:$4 sm:$0xff]   ;;  %v1695_v2 = vld [vmem:[%s2009_s10 + $0x1e8] ss:$16 sps:$4 sm:$0xff]  }
  0x6e   : > { %746 = vmatpush1.bf16.msra.mxu0 %v1634_v23  ;;  %787 = vmatpush1.bf16.msra.mxu1 %v1635_v24  ;;  %v1698_v4 = vld [vmem:[%s2015_s7 + $0x40] sm:$0xff]   ;;  %v1702_v8 = vld [vmem:[%s2015_s7 + $0x48] sm:$0xff]   ;;  %v1706_v12 = vld [vmem:[%s2015_s7 + $0x50] sm:$0xff]  }
  0x6f   : > { %747 = vmatprep.subr.bf16.mxu0 %v1636_v25  ;;  %788 = vmatprep.subr.bf16.mxu1 %v1638_v26  ;;  %v1699_v5 = vld [vmem:[%s2015_s7 + $0xc0] sm:$0xff]   ;;  %v1703_v9 = vld [vmem:[%s2015_s7 + $0xc8] sm:$0xff]   ;;  %v1707_v13 = vld [vmem:[%s2015_s7 + $0xd0] sm:$0xff]  }
  0x70   : > { %v1700_v6 = vld [vmem:[%s2015_s7] sm:$0xff]   ;;  %v1704_v10 = vld [vmem:[%s2015_s7 + $0x8] sm:$0xff]   ;;  %v1708_v14 = vld [vmem:[%s2015_s7 + $0x10] sm:$0xff]  }
  0x71   : > { %v1701_v7 = vld [vmem:[%s2015_s7 + $0x80] sm:$0xff]   ;;  %v1705_v11 = vld [vmem:[%s2015_s7 + $0x88] sm:$0xff]   ;;  %v1709_v15 = vld [vmem:[%s2015_s7 + $0x90] sm:$0xff]  }
  0x72   : > { %748 = vmatpush1.bf16.msra.mxu0 %v1640_v27  ;;  %789 = vmatpush1.bf16.msra.mxu1 %v1641_v28  ;;  %v1710_v16 = vld [vmem:[%s2015_s7 + $0x58] sm:$0xff]   ;;  %v1714_v20 = vld [vmem:[%s2015_s7 + $0x60] sm:$0xff]   ;;  %v1718_v24 = vld [vmem:[%s2015_s7 + $0x68] sm:$0xff]  }
  0x73   : > { %749 = vmatprep.subr.bf16.mxu0 %v1642_v29  ;;  %790 = vmatprep.subr.bf16.mxu1 %v1644_v30  ;;  %v1711_v17 = vld [vmem:[%s2015_s7 + $0xd8] sm:$0xff]   ;;  %v1715_v21 = vld [vmem:[%s2015_s7 + $0xe0] sm:$0xff]   ;;  %v1719_v25 = vld [vmem:[%s2015_s7 + $0xe8] sm:$0xff]  }
  0x74   : > { %v1712_v18 = vld [vmem:[%s2015_s7 + $0x18] sm:$0xff]   ;;  %v1716_v22 = vld [vmem:[%s2015_s7 + $0x20] sm:$0xff]   ;;  %v1720_v26 = vld [vmem:[%s2015_s7 + $0x28] sm:$0xff]  }
  0x75   : > { %v1713_v19 = vld [vmem:[%s2015_s7 + $0x98] sm:$0xff]   ;;  %v1717_v23 = vld [vmem:[%s2015_s7 + $0xa0] sm:$0xff]   ;;  %v1721_v27 = vld [vmem:[%s2015_s7 + $0xa8] sm:$0xff]  }
  0x76   : > { %750 = vmatpush1.bf16.msra.mxu0 %v1646_v31  ;;  %791 = vmatpush1.bf16.msra.mxu1 %v1647_v32  ;;  %v1722_v28 = vld [vmem:[%s2015_s7 + $0x70] sm:$0xff]   ;;  %v1726_v32 = vld [vmem:[%s2015_s7 + $0x78] sm:$0xff]  }
  0x77   : > { %751 = vmatprep.subr.bf16.mxu0 %v1648_v33  ;;  %792 = vmatprep.subr.bf16.mxu1 %v1650_v34  ;;  %v1723_v29 = vld [vmem:[%s2015_s7 + $0xf0] sm:$0xff]   ;;  %v1727_v33 = vld [vmem:[%s2015_s7 + $0xf8] sm:$0xff]  }
  0x78   : > { %v1724_v30 = vld [vmem:[%s2015_s7 + $0x30] sm:$0xff]   ;;  %v1728_v34 = vld [vmem:[%s2015_s7 + $0x38] sm:$0xff]  }
  0x79   : > { %v1725_v31 = vld [vmem:[%s2015_s7 + $0xb0] sm:$0xff]  }
  0x7a   : > { %752 = vmatpush1.bf16.msra.mxu0 %v1652_v35  ;;  %793 = vmatpush1.bf16.msra.mxu1 %v1653_v36  ;;  %v1729_v35 = vld [vmem:[%s2015_s7 + $0xb8] sm:$0xff]  }
  0x7b   : > { %753 = vmatprep.subr.bf16.mxu0 %v1654_v37  ;;  %794 = vmatprep.subr.bf16.mxu1 %v1656_v38 }
  0x7e   : > { %754 = vmatpush1.bf16.msra.mxu0 %v1658_v39  ;;  %795 = vmatpush1.bf16.msra.mxu1 %v1659_v40 }
  0x7f   : > { %755 = vmatprep.subr.bf16.mxu0 %v1660_v41  ;;  %796 = vmatprep.subr.bf16.mxu1 %v1662_v42 }
  0x82   : > { %756 = vmatpush1.bf16.msra.mxu0 %v1664_v43  ;;  %797 = vmatpush1.bf16.msra.mxu1 %v1665_v44 }
  0x83   : > { %757 = vmatprep.subr.bf16.mxu0 %v1666_v45  ;;  %798 = vmatprep.subr.bf16.mxu1 %v1668_v46 }
  0x86   : > { %758 = vmatpush1.bf16.msra.mxu0 %v1670_v47  ;;  %799 = vmatpush1.bf16.msra.mxu1 %v1671_v48 }
  0x87   : > { %759 = vmatprep.subr.bf16.mxu0 %v1672_v50  ;;  %800 = vmatprep.subr.bf16.mxu1 %v1674_v51 }
  0x8a   : > { %760 = vmatpush1.bf16.msra.mxu0 %v1676_v53  ;;  %801 = vmatpush1.bf16.msra.mxu1 %v1677_v54 }
  0x8b   : > { %761 = vmatprep.subr.bf16.mxu0 %v1678_v55  ;;  %802 = vmatprep.subr.bf16.mxu1 %v1680_v56 }
  0x8e   : > { %762 = vmatpush1.bf16.msra.mxu0 %v1682_v57  ;;  %803 = vmatpush1.bf16.msra.mxu1 %v1683_v58 }
  0x8f   : > { %763 = vmatprep.subr.bf16.mxu0 %v1684_v59  ;;  %804 = vmatprep.subr.bf16.mxu1 %v1686_v60 }
  0x92   : > { %764 = vmatpush1.bf16.msra.mxu0 %v1688_v61  ;;  %805 = vmatpush1.bf16.msra.mxu1 %v1689_v62 }
  0x93   : > { %765 = vmatprep.subr.bf16.mxu0 %v1690_v63  ;;  %806 = vmatprep.subr.bf16.mxu1 %v1692_v0 }
  0x96   : > { %766 = vmatpush1.bf16.msra.mxu0 %v1694_v1  ;;  %807 = vmatpush1.bf16.msra.mxu1 %v1695_v2 }
  0x97   : > { %1506 = vmatprep.subr.bf16.mxu0 %v1698_v4  ;;  %1528 = vmatprep.subr.bf16.mxu1 %v1699_v5 }
  0x99   : > { %768 = vmatmul.mubr.bf16.vlgmr.msra.gmra.mrb[0].mxu0 %v1402_v3  ;;  %809 = vmatmul.mubr.bf16.vlgmr.msra.gmra.mrb[0].mxu1 %v1402_v3 }
  0x9a   : > { %1507 = vmatpush3.bf16.msra.mxu0 %v1700_v6  ;;  %1529 = vmatpush3.bf16.msra.mxu1 %v1701_v7 }
  0x9b   : > { %1508 = vmatprep.subr.bf16.mxu0 %v1702_v8  ;;  %1530 = vmatprep.subr.bf16.mxu1 %v1703_v9 }
  0x9e   : > { %1509 = vmatpush3.bf16.msra.mxu0 %v1704_v10  ;;  %1531 = vmatpush3.bf16.msra.mxu1 %v1705_v11 }
  0x9f   : > { %1510 = vmatprep.subr.bf16.mxu0 %v1706_v12  ;;  %1532 = vmatprep.subr.bf16.mxu1 %v1707_v13 }
  0xa2   : > { %1511 = vmatpush3.bf16.msra.mxu0 %v1708_v14  ;;  %1533 = vmatpush3.bf16.msra.mxu1 %v1709_v15 }
  0xa3   : > { %1512 = vmatprep.subr.bf16.mxu0 %v1710_v16  ;;  %1534 = vmatprep.subr.bf16.mxu1 %v1711_v17 }
  0xa6   : > { %1513 = vmatpush3.bf16.msra.mxu0 %v1712_v18  ;;  %1535 = vmatpush3.bf16.msra.mxu1 %v1713_v19 }
  0xa7   : > { %1514 = vmatprep.subr.bf16.mxu0 %v1714_v20  ;;  %1536 = vmatprep.subr.bf16.mxu1 %v1715_v21 }
  0xaa   : > { %1515 = vmatpush3.bf16.msra.mxu0 %v1716_v22  ;;  %1537 = vmatpush3.bf16.msra.mxu1 %v1717_v23 }
  0xab   : > { %1516 = vmatprep.subr.bf16.mxu0 %v1718_v24  ;;  %1538 = vmatprep.subr.bf16.mxu1 %v1719_v25 }
  0xae   : > { %1517 = vmatpush3.bf16.msra.mxu0 %v1720_v26  ;;  %1539 = vmatpush3.bf16.msra.mxu1 %v1721_v27 }
  0xaf   : > { %1518 = vmatprep.subr.bf16.mxu0 %v1722_v28  ;;  %1540 = vmatprep.subr.bf16.mxu1 %v1723_v29 }
  0xb2   : > { %1519 = vmatpush3.bf16.msra.mxu0 %v1724_v30  ;;  %1541 = vmatpush3.bf16.msra.mxu1 %v1725_v31 }
  0xb3   : > { %1520 = vmatprep.subr.bf16.mxu0 %v1726_v32  ;;  %1542 = vmatprep.subr.bf16.mxu1 %v1727_v33 }
  0xb6   : > { %1521 = vmatpush3.bf16.msra.mxu0 %v1728_v34  ;;  %1543 = vmatpush3.bf16.msra.mxu1 %v1729_v35 }
 0x16c   : > { %v769_v36 = vpop.f32.mrb[0].mxu0  ;;  %v810_v37 = vpop.f32.mrb[0].mxu1 }
 0x16d   : > { %v817_v38 = vrot.slane %v769_v36, 4  ;;  %v829_v39 = vrot.slane %v810_v37, 4  ;;  %v771_v40 = vpop.f32.mrb[1].mxu0  ;;  %v812_v41 = vpop.f32.mrb[1].mxu1 }
 0x16e   : > { %v823_v42 = vrot.slane %v771_v40, 4  ;;  %v835_v43 = vrot.slane %v812_v41, 4  ;;  %v773_v44 = vpop.f32.mrb[2].mxu0  ;;  %v814_v45 = vpop.f32.mrb[2].mxu1 }
 0x16f   : > { %v818_v46 = vadd.f32 %v817_v38, %v769_v36  ;;  %v830_v47 = vadd.f32 %v829_v39, %v810_v37  ;;  %v774_v48 = vpop.f32.mrb[3].mxu0  ;;  %v815_v49 = vpop.f32.mrb[3].mxu1 }
 0x170   : > { %v824_v50 = vadd.f32 %v823_v42, %v771_v40  ;;  %v836_v51 = vadd.f32 %v835_v43, %v812_v41  ;;  %v896_v42 = vlaneseq }
 0x171   : > { %v819_v52 = vrot.slane %v818_v46, 2  ;;  %v831_v53 = vrot.slane %v830_v47, 2 }
 0x172   : > { %v825_v54 = vrot.slane %v824_v50, 2  ;;  %v837_v55 = vrot.slane %v836_v51, 2  ;;  %v897_v49 = vshrl.u32 %v896_v42, 7 }
 0x173   : > { %v820_v56 = vadd.f32 %v819_v52, %v818_v46  ;;  %v832_v57 = vadd.f32 %v831_v53, %v830_v47 }
 0x174   : > { %v826_v58 = vadd.f32 %v825_v54, %v824_v50  ;;  %v838_v59 = vadd.f32 %v837_v55, %v836_v51  ;;  %v898_v50 = vsub.s32 0, %v897_v49  ;;  %v894_v51 = vld [vmem:[%s329_s12] sm:$0xf]  ;;  %v906_v52 = vsub.s32 2, %v897_v49 }
 0x175   : > { %v821_v60 = vrot.slane %v820_v56, 1  ;;  %v833_v61 = vrot.slane %v832_v57, 1  ;;  %v902_v53 = vsub.s32 1, %v897_v49  ;;  %v920_v54 = vld [vmem:[%s334_s18] sm:$0xf]  ;;  %v910_v55 = vsub.s32 3, %v897_v49 }
 0x176   : > { %v827_v62 = vrot.slane %v826_v58, 1  ;;  %v839_v63 = vrot.slane %v838_v59, 1 }
 0x177   : > { %v822_v0 = vadd.f32 %v821_v60, %v820_v56  ;;  %v834_v1 = vadd.f32 %v833_v61, %v832_v57  ;;  %v899_v56 = vrot.slane %v894_v51, %v898_v50  ;;  %v903_v61 = vrot.slane %v894_v51, %v902_v53 }
 0x178   : > { %v828_v2 = vadd.f32 %v827_v62, %v826_v58  ;;  %v840_v3 = vadd.f32 %v839_v63, %v838_v59  ;;  %v907_v58 = vrot.slane %v894_v51, %v906_v52  ;;  %v925_v62 = vrot.slane %v920_v54, %v898_v50 }
 0x179   : > { %v842_v4 = vmul.f32 0.125, %v822_v0  ;;  %v844_v5 = vmul.f32 0.125, %v834_v1  ;;  %v911_v1 = vrot.slane %v894_v51, %v910_v55 }
 0x17a   : > { %v843_v6 = vmul.f32 0.125, %v828_v2  ;;  %v845_v7 = vmul.f32 0.125, %v840_v3  ;;  %v933_v2 = vrot.slane %v920_v54, %v906_v52 }
 0x17b   : > { %v846_v8 = vsub.f32 %v769_v36, %v842_v4  ;;  %v848_v9 = vsub.f32 %v810_v37, %v844_v5 }
 0x17c   : > { %v2135_v10 = vsub.f32 %v771_v40, %v843_v6  ;;  %v2137_v11 = vsub.f32 %v812_v41, %v845_v7  ;;  %v929_v6 = vrot.slane %v920_v54, %v902_v53 }
 0x17d   : > { %v850_v12 = vmul.f32 %v846_v8, %v846_v8  ;;  %v852_v13 = vmul.f32 %v848_v9, %v848_v9 }
 0x17e   : > { %v851_v14 = vmul.f32 %v2135_v10, %v2135_v10  ;;  %v853_v15 = vmul.f32 %v2137_v11, %v2137_v11 }
 0x17f   : > { %v854_v16 = vrot.slane %v850_v12, 4  ;;  %v866_v17 = vrot.slane %v852_v13, 4 }
 0x180   : > { %v860_v18 = vrot.slane %v851_v14, 4  ;;  %v872_v19 = vrot.slane %v853_v15, 4 }
 0x181   : > { %v855_v20 = vadd.f32 %v854_v16, %v850_v12  ;;  %v867_v21 = vadd.f32 %v866_v17, %v852_v13  ;;  %v937_v13 = vrot.slane %v920_v54, %v910_v55 }
 0x182   : > { %v861_v22 = vadd.f32 %v860_v18, %v851_v14  ;;  %v873_v23 = vadd.f32 %v872_v19, %v853_v15 }
 0x183   : > { %v856_v24 = vrot.slane %v855_v20, 2  ;;  %v868_v25 = vrot.slane %v867_v21, 2 }
 0x184   : > { %v862_v26 = vrot.slane %v861_v22, 2  ;;  %v874_v27 = vrot.slane %v873_v23, 2 }
 0x185   : > { %v857_v28 = vadd.f32 %v856_v24, %v855_v20  ;;  %v869_v29 = vadd.f32 %v868_v25, %v867_v21 }
 0x186   : > { %v863_v30 = vadd.f32 %v862_v26, %v861_v22  ;;  %v875_v31 = vadd.f32 %v874_v27, %v873_v23 }
 0x187   : > { %v858_v32 = vrot.slane %v857_v28, 1  ;;  %v870_v33 = vrot.slane %v869_v29, 1 }
 0x188   : > { %v864_v34 = vrot.slane %v863_v30, 1  ;;  %v876_v35 = vrot.slane %v875_v31, 1 }
 0x189   : > { %v859_v36 = vadd.f32 %v858_v32, %v857_v28  ;;  %v871_v37 = vadd.f32 %v870_v33, %v869_v29  ;;  %v950_v33 = vld [vmem:[%s2190_s6] sm:$0xff] }
 0x18a   : > { %v865_v38 = vadd.f32 %v864_v34, %v863_v30  ;;  %v877_v39 = vadd.f32 %v876_v35, %v875_v31 }
 0x18b   : > { %v878_v40 = vmul.f32 0.125, %v859_v36  ;;  %v880_v41 = vmul.f32 0.125, %v871_v37 }
 0x18c   : > { %v879_v43 = vmul.f32 0.125, %v865_v38  ;;  %v881_v44 = vmul.f32 0.125, %v877_v39  ;;  %v1501_v38 = vld [vmem:[%s2189_s5] ss:$0 sm:$0xff] (!%p1500_p3) }
 0x18d   : > { %v882_v45 = vadd.f32 1e-05, %v878_v40  ;;  %v884_v46 = vadd.f32 1e-05, %v880_v41 }
 0x18e   : > { %v883_v47 = vadd.f32 1e-05, %v879_v43  ;;  %v885_v48 = vadd.f32 1e-05, %v881_v44 }
 0x18f   : > { %1730 = vrsqrt.f32 %v882_v45 }
 0x190   : > { %1732 = vrsqrt.f32 %v884_v46 }
 0x191   : > { %1734 = vrsqrt.f32 %v883_v47 }
 0x192   : > { %1736 = vrsqrt.f32 %v885_v48 }
 0x199   : > { %v1731_v57 = vpop.eup %1730 }
 0x19a   : > { %v1733_v59 = vpop.eup %1732  ;;  %v890_v60 = vmul.f32 %v1731_v57, %v846_v8 }
 0x19b   : > { %v1735_v63 = vpop.eup %1734  ;;  %v892_v0 = vmul.f32 %v1733_v59, %v848_v9 }
 0x19c   : > { %v1737_v3 = vpop.eup %1736  ;;  %v916_v4 = vmul.f32 %v899_v56, %v890_v60  ;;  %v891_v5 = vmul.f32 %v1735_v63, %v2135_v10 }
 0x19d   : > { %v918_v7 = vmul.f32 %v907_v58, %v892_v0  ;;  %v893_v12 = vmul.f32 %v1737_v3, %v2137_v11 }
 0x19e   : > { %v917_v14 = vmul.f32 %v903_v61, %v891_v5  ;;  %v942_v15 = vadd.f32 %v925_v62, %v916_v4 }
 0x19f   : > { %v919_v16 = vmul.f32 %v911_v1, %v893_v12  ;;  %v944_v17 = vadd.f32 %v933_v2, %v918_v7 }
 0x1a0   : > { %v943_v8 = vadd.f32 %v929_v6, %v917_v14  ;;  %v946_v19 = vmax.f32 %v942_v15, 0.0 }
 0x1a1   : > { %v945_v18 = vadd.f32 %v937_v13, %v919_v16  ;;  %v948_v9 = vmax.f32 %v944_v17, 0.0 }
 0x1a2   : > { %v947_v20 = vmax.f32 %v943_v8, 0.0  ;;  %v951_v24 = vpack.c.bf16 %v946_v19, %v946_v19 }
 0x1a3   : > { %v949_v21 = vmax.f32 %v945_v18, 0.0  ;;  %v953_v10 = vpack.c.bf16 %v948_v9, %v948_v9 }
 0x1a4   : > { %v952_v22 = vpack.c.bf16 %v947_v20, %v947_v20 }
 0x1a5   : > { %v954_v23 = vpack.c.bf16 %v949_v21, %v949_v21 }
 0x1a6   : > { %1243 = vmatprep.mubr.bf16.mxu0 %v952_v22 }
 0x1a7   : > { %1283 = vmatprep.mubr.bf16.mxu1 %v954_v23  ;;  %1244 = vmatmul.mubr.bf16.vlgmr.msra.gmra.mrb[4].mxu0 %v951_v24 }
 0x1a8   : > { %1284 = vmatmul.mubr.bf16.vlgmr.msra.gmra.mrb[4].mxu1 %v953_v10 }
 0x27a   : > { %v1522_v11 = vpop.f32.mrb[4].mxu0 }
 0x27b   : > { %v1544_v25 = vpop.f32.mrb[4].mxu1  ;;  %v1523_v26 = vpop.f32.mrb[5].mxu0 }
 0x27c   : > { %v1524_v27 = vadd.f32 %v1523_v26, %v1522_v11  ;;  %v1545_v28 = vpop.f32.mrb[5].mxu1  ;;  %v1525_v29 = vpop.f32.mrb[6].mxu0 }
 0x27d   : > { %v1546_v30 = vadd.f32 %v1545_v28, %v1544_v25  ;;  %v1547_v31 = vpop.f32.mrb[6].mxu1  ;;  %v1526_v32 = vpop.f32.mrb[7].mxu0  ;;  %1296 = sbr.rel (%p1500_p3) target bundleno = 654 (0x28e), region = 60 }
 0x27e   : > { %v1548_v34 = vpop.f32.mrb[7].mxu1 }
 0x27f   : > { %v1286_v35 = vadd.f32 %v1546_v30, %v1524_v27 }
 0x281   : > { %v1291_v36 = vadd.f32 %v1286_v35, %v950_v33 }
 0x283   : > { %1292 = vst [vmem:[%s2190_s6] sm:$0xff] %v1291_v36 }
 0x28a   : > { %v1297_v37 = vld [vmem:[%s2190_s6] sm:$0xff] }
 0x28b   : > { %v1305_v39 = vadd.f32 %v1501_v38, %v1297_v37 }
 0x28d   : > { %1306 = vst [vmem:[%s2190_s6] sm:$0xff] %v1305_v39 }
 0x28e PF: > { %p19_p6 = scmp.ge.s32.totalorder %s1903_s26, 4   ;;  %s2196_s21 = smov %s1828_s22 }
 0x28f   : > { %s2197_s22 = smov %s1832_s23  ;;  %s2198_s23 = smov %s1913_s29 }
 0x290   : > { %s2199_s24 = smov %s1903_s26  ;;  %21 = sbr.rel (!%p19_p6) target bundleno = 5 (0x5), region = 107 }
 0x297   :  { %1318 = vsyncpa [#allocation3], 1 }
 0x298   :  { %1320 = vsyncpa [#allocation3 + $0x1], 1 }
 0x299   :  { %1321 = vsyncpa [#allocation5], 1 }
 0x29a   :  { %1323 = vsyncpa [#allocation5 + $0x1], 1 }

// kernel: siamese_arm_forward.3
= control target key start
LH: loop header
LB: loop body
LE: loop exit
PB: predicated region body
PF: predicated region fallthrough
CT: control target
= control target key end

     0   :  { %11 = vsyncpa [#allocation4], 0  ;;  %s1575_s21 = smov 0   ;;  %s1577_s22 = smov 0   ;;  %s1826_s0 = inlined_call_operand.vmem [shape: bf16[8,128], index: 0, kind: input, shape index: {}]   ;;  %s1827_s1 = inlined_call_operand.vmem [shape: bf16[128,1024], index: 1, kind: input, shape index: {}]   ;;  %s1828_s2 = inlined_call_operand.vmem [shape: f32[1,1024], index: 2, kind: input, shape index: {}]   ;;  %s1829_s3 = inlined_call_operand.vmem [shape: f32[1,1024], index: 3, kind: input, shape index: {}]   ;;  %s1830_s4 = inlined_call_operand.vmem [shape: bf16[1024,128], index: 4, kind: input, shape index: {}]   ;;  %s1831_s5 = inlined_call_operand.vmem [shape: f32[1,128], index: 5, kind: input, shape index: {}]   ;;  %s1832_s6 = inlined_call_operand.hbm [shape: f32[8,128], index: 6, kind: output, shape index: {}]  }
   0x1   :  { %s1579_s23 = smov 0  }
   0x2 LB: > { %s1591_s24 = sadd.s32 4294967295, %s1535_s23   ;;  %s1594_s25 = sadd.s32 1, %s1535_s23   ;;  %s1535_s23 = sphi %s1579_s23, %s1835_s23   ;;  %s1531_s22 = sphi %s1577_s22, %s1834_s22   ;;  %s1527_s21 = sphi %s1575_s21, %s1833_s21  }
   0x3   : > { %s42_s26 = ssub.s32 %s1535_s23, %s1594_s25  ;;  %s45_s27 = sadd.s32 1, %s1531_s22 }
   0x4   : > { %p43_p0 = scmp.eq.s32.totalorder %s42_s26, 0  ;;  %p52_p1 = scmp.ne.s32.totalorder %s1531_s22, %s1527_s21 }
   0x5   : > { %p53_p2 = scmp.eq.s32.totalorder %s1535_s23, 0  ;;  %p1236_p4 = scmp.ge.s32.totalorder %s1535_s23, 2 }
   0x6   : > { %s1603_s28 = scalar_select %p43_p0, %s1531_s22, %s45_s27  }
   0x7   : > { %p54_p3 = por %p53_p2, %p52_p1  ;;  %204 = sbr.rel (%p1236_p4) target bundleno = 34 (0x22), region = 24 }
   0xe   : > { %207 = sbr.rel (!%p54_p3) target bundleno = 34 (0x22), region = 28  ;;  %s209_s29 = sand.u32 (%p54_p3), 1, %s1531_s22  }
   0xf   : > { %s1317_s30 = sshll.u32 (%p54_p3), %s1535_s23, 4  ;;  %s1237_s7 = sshll.u32 (%p54_p3), %s209_s29, 8 }
  0x10   : > { %s1611_s10 = scalar_lea.vmem (%p54_p3), %s1827_s1, %s1317_s30  ;;  %s1616_s11 = scalar_lea.vmem (%p54_p3), [#allocation2], %s1237_s7 }
  0x11   : > { %v227_v0 = vld [vmem:[%s1611_s10] sm:$0xff] (%p54_p3)  ;;  %v229_v1 = vld [vmem:[%s1611_s10 + $0x8] sm:$0xff] (%p54_p3) }
  0x12   : > { %v231_v2 = vld [vmem:[%s1611_s10 + $0x20] sm:$0xff] (%p54_p3)  ;;  %228 = vst [vmem:[%s1616_s11] sm:$0xff] (%p54_p3), %v227_v0  ;;  %230 = vst [vmem:[%s1616_s11 + $0x8] sm:$0xff] (%p54_p3), %v229_v1  ;;  %v233_v3 = vld [vmem:[%s1611_s10 + $0x28] sm:$0xff] (%p54_p3) }
  0x13   : > { %232 = vst [vmem:[%s1616_s11 + $0x10] sm:$0xff] (%p54_p3), %v231_v2  ;;  %v235_v4 = vld [vmem:[%s1611_s10 + $0x40] sm:$0xff] (%p54_p3)  ;;  %v237_v5 = vld [vmem:[%s1611_s10 + $0x48] sm:$0xff] (%p54_p3)  ;;  %234 = vst [vmem:[%s1616_s11 + $0x18] sm:$0xff] (%p54_p3), %v233_v3 }
  0x14   : > { %236 = vst [vmem:[%s1616_s11 + $0x20] sm:$0xff] (%p54_p3), %v235_v4  ;;  %238 = vst [vmem:[%s1616_s11 + $0x28] sm:$0xff] (%p54_p3), %v237_v5  ;;  %v239_v6 = vld [vmem:[%s1611_s10 + $0x60] sm:$0xff] (%p54_p3)  ;;  %v241_v7 = vld [vmem:[%s1611_s10 + $0x68] sm:$0xff] (%p54_p3) }
  0x15   : > { %v243_v8 = vld [vmem:[%s1611_s10 + $0x80] sm:$0xff]  ;;  %240 = vst [vmem:[%s1616_s11 + $0x30] sm:$0xff] %v239_v6  ;;  %242 = vst [vmem:[%s1616_s11 + $0x38] sm:$0xff] %v241_v7  ;;  %v245_v9 = vld [vmem:[%s1611_s10 + $0x88] sm:$0xff] }
  0x16   : > { %244 = vst [vmem:[%s1616_s11 + $0x40] sm:$0xff] %v243_v8  ;;  %v247_v10 = vld [vmem:[%s1611_s10 + $0xa0] sm:$0xff]  ;;  %v249_v11 = vld [vmem:[%s1611_s10 + $0xa8] sm:$0xff]  ;;  %246 = vst [vmem:[%s1616_s11 + $0x48] sm:$0xff] %v245_v9 }
  0x17   : > { %248 = vst [vmem:[%s1616_s11 + $0x50] sm:$0xff] %v247_v10  ;;  %250 = vst [vmem:[%s1616_s11 + $0x58] sm:$0xff] %v249_v11  ;;  %v251_v12 = vld [vmem:[%s1611_s10 + $0xc0] sm:$0xff]  ;;  %v253_v13 = vld [vmem:[%s1611_s10 + $0xc8] sm:$0xff] }
  0x18   : > { %v255_v14 = vld [vmem:[%s1611_s10 + $0xe0] sm:$0xff]  ;;  %252 = vst [vmem:[%s1616_s11 + $0x60] sm:$0xff] %v251_v12  ;;  %254 = vst [vmem:[%s1616_s11 + $0x68] sm:$0xff] %v253_v13  ;;  %v257_v15 = vld [vmem:[%s1611_s10 + $0xe8] sm:$0xff] }
  0x19   : > { %256 = vst [vmem:[%s1616_s11 + $0x70] sm:$0xff] %v255_v14  ;;  %v259_v16 = vld [vmem:[%s1611_s10 + $0x100] sm:$0xff]  ;;  %v261_v17 = vld [vmem:[%s1611_s10 + $0x108] sm:$0xff]  ;;  %258 = vst [vmem:[%s1616_s11 + $0x78] sm:$0xff] %v257_v15 }
  0x1a   : > { %260 = vst [vmem:[%s1616_s11 + $0x80] sm:$0xff] %v259_v16  ;;  %262 = vst [vmem:[%s1616_s11 + $0x88] sm:$0xff] %v261_v17  ;;  %v263_v18 = vld [vmem:[%s1611_s10 + $0x120] sm:$0xff]  ;;  %v265_v19 = vld [vmem:[%s1611_s10 + $0x128] sm:$0xff] }
  0x1b   : > { %v267_v20 = vld [vmem:[%s1611_s10 + $0x140] sm:$0xff]  ;;  %264 = vst [vmem:[%s1616_s11 + $0x90] sm:$0xff] %v263_v18  ;;  %266 = vst [vmem:[%s1616_s11 + $0x98] sm:$0xff] %v265_v19  ;;  %v269_v21 = vld [vmem:[%s1611_s10 + $0x148] sm:$0xff] }
  0x1c   : > { %268 = vst [vmem:[%s1616_s11 + $0xa0] sm:$0xff] %v267_v20  ;;  %v271_v22 = vld [vmem:[%s1611_s10 + $0x160] sm:$0xff]  ;;  %v273_v23 = vld [vmem:[%s1611_s10 + $0x168] sm:$0xff]  ;;  %270 = vst [vmem:[%s1616_s11 + $0xa8] sm:$0xff] %v269_v21 }
  0x1d   : > { %272 = vst [vmem:[%s1616_s11 + $0xb0] sm:$0xff] %v271_v22  ;;  %274 = vst [vmem:[%s1616_s11 + $0xb8] sm:$0xff] %v273_v23  ;;  %v275_v24 = vld [vmem:[%s1611_s10 + $0x180] sm:$0xff]  ;;  %v277_v25 = vld [vmem:[%s1611_s10 + $0x188] sm:$0xff] }
  0x1e   : > { %v279_v26 = vld [vmem:[%s1611_s10 + $0x1a0] sm:$0xff]  ;;  %276 = vst [vmem:[%s1616_s11 + $0xc0] sm:$0xff] %v275_v24  ;;  %278 = vst [vmem:[%s1616_s11 + $0xc8] sm:$0xff] %v277_v25  ;;  %v281_v27 = vld [vmem:[%s1611_s10 + $0x1a8] sm:$0xff] }
  0x1f   : > { %280 = vst [vmem:[%s1616_s11 + $0xd0] sm:$0xff] %v279_v26  ;;  %v283_v28 = vld [vmem:[%s1611_s10 + $0x1c0] sm:$0xff]  ;;  %v285_v29 = vld [vmem:[%s1611_s10 + $0x1c8] sm:$0xff]  ;;  %282 = vst [vmem:[%s1616_s11 + $0xd8] sm:$0xff] %v281_v27 }
  0x20   : > { %284 = vst [vmem:[%s1616_s11 + $0xe0] sm:$0xff] %v283_v28  ;;  %286 = vst [vmem:[%s1616_s11 + $0xe8] sm:$0xff] %v285_v29  ;;  %v287_v30 = vld [vmem:[%s1611_s10 + $0x1e0] sm:$0xff]  ;;  %v289_v31 = vld [vmem:[%s1611_s10 + $0x1e8] sm:$0xff] }
  0x21   : > { %288 = vst [vmem:[%s1616_s11 + $0xf0] sm:$0xff] %v287_v30  ;;  %290 = vst [vmem:[%s1616_s11 + $0xf8] sm:$0xff] %v289_v31 }
  0x22 PF: > { %p1240_p5 = scmp.ge.s32.totalorder %s1535_s23, 1  ;;  %p320_p6 = scmp.lt.s32.totalorder %s1535_s23, 3 }
  0x24   : > { %p321_p7 = pnand %p1240_p5, %p320_p6 }
  0x25   : > { %s327_s12 = sand.u32 (!%p321_p7), 1, %s1527_s21   ;;  %s1242_s13 = sshll.u32 (!%p321_p7), %s1591_s24, 2 }
  0x26   : > { %324 = sbr.rel (%p321_p7) target bundleno = 614 (0x266), region = 63  ;;  %s1241_s14 = sshll.u32 (!%p321_p7), %s327_s12, 8 }
  0x27   : > { %p366_p8 = scmp.lt.s32.totalorder (!%p321_p7), %s1242_s13, 7  ;;  %s1244_s15 = sshll.u32 (!%p321_p7), %s1591_s24, 6 }
  0x28   : > { %p376_p9 = scmp.lt.s32.totalorder (!%p321_p7), %s1244_s15, 127  ;;  %s1699_s30 = scalar_lea.vmem (!%p321_p7), [#allocation2], %s1241_s14 }
  0x29   : > { %p1246_p10 = scmp.ne.s32.totalorder (!%p321_p7), %s1591_s24, 0 }
  0x2d   : > { %s1837_s13 = smov (!%p366_p8, %s1242_s13), 7  ;;  %s1839_s15 = smov (!%p376_p9, %s1244_s15), 127 }
  0x2e   : > { %s368_s18 = scalar_lea.vmem %s1828_s2, %s1837_s13  ;;  %s373_s23 = scalar_lea.vmem %s1829_s3, %s1837_s13  ;;  %v1537_v32 = vmov (!%p1246_p10), 0.0  }
  0x2f   : > { %s1245_s26 = sshll.u32 %s1839_s15, 2  ;;  %385 = sbr.rel (%p1246_p10) target bundleno = 54 (0x36), region = 71  ;;  %386 = vst [vmem:[#allocation3] sm:$0xff] (!%p1246_p10), %v1537_v32 }
  0x30   : > { %s1697_s29 = scalar_lea.vmem %s1830_s4, %s1245_s26 }
  0x36 PF: > { %v1395_v33 = vld [vmem:[%s1699_s30 + $0x4] ss:$16 sps:$4 sm:$0xff]   ;;  %v1397_v34 = vld [vmem:[%s1699_s30 + $0xc] ss:$16 sps:$4 sm:$0xff]   ;;  %v1538_v35 = vmov 0   ;;  %p1311_p11 = scmp.ne.s32.totalorder %s1591_s24, 1 }
  0x37   : > { %612 = vmatprep.mubr.bf16.mxu0 %v1538_v35  ;;  %653 = vmatprep.mubr.bf16.mxu1 %v1538_v35  ;;  %v1399_v36 = vld [vmem:[%s1699_s30] ss:$16 sps:$4 sm:$0xff]   ;;  %v1400_v37 = vld [vmem:[%s1699_s30 + $0x8] ss:$16 sps:$4 sm:$0xff]   ;;  %v1401_v38 = vld [vmem:[%s1699_s30 + $0x24] ss:$16 sps:$4 sm:$0xff]  }
  0x38   : > { %580 = vmatprep.subr.bf16.mxu0 %v1395_v33  ;;  %621 = vmatprep.subr.bf16.mxu1 %v1397_v34  ;;  %v1403_v39 = vld [vmem:[%s1699_s30 + $0x2c] ss:$16 sps:$4 sm:$0xff]   ;;  %v1405_v40 = vld [vmem:[%s1699_s30 + $0x20] ss:$16 sps:$4 sm:$0xff]   ;;  %v1406_v41 = vld [vmem:[%s1699_s30 + $0x28] ss:$16 sps:$4 sm:$0xff]  }
  0x39   : > { %581 = vmatpush1.bf16.msra.mxu0 %v1399_v36  ;;  %622 = vmatpush1.bf16.msra.mxu1 %v1400_v37  ;;  %v1407_v42 = vld [vmem:[%s1699_s30 + $0x44] ss:$16 sps:$4 sm:$0xff]   ;;  %v1409_v43 = vld [vmem:[%s1699_s30 + $0x4c] ss:$16 sps:$4 sm:$0xff]   ;;  %v1411_v44 = vld [vmem:[%s1699_s30 + $0x40] ss:$16 sps:$4 sm:$0xff]  }
  0x3a   : > { %582 = vmatprep.subr.bf16.mxu0 %v1401_v38  ;;  %623 = vmatprep.subr.bf16.mxu1 %v1403_v39  ;;  %v1412_v45 = vld [vmem:[%s1699_s30 + $0x48] ss:$16 sps:$4 sm:$0xff]   ;;  %v1413_v46 = vld [vmem:[%s1699_s30 + $0x64] ss:$16 sps:$4 sm:$0xff]   ;;  %v1415_v47 = vld [vmem:[%s1699_s30 + $0x6c] ss:$16 sps:$4 sm:$0xff]  }
  0x3b   : > { %v1417_v48 = vld [vmem:[%s1699_s30 + $0x60] ss:$16 sps:$4 sm:$0xff]   ;;  %v1418_v49 = vld [vmem:[%s1699_s30 + $0x68] ss:$16 sps:$4 sm:$0xff]   ;;  %v1419_v50 = vld [vmem:[%s1699_s30 + $0x84] ss:$16 sps:$4 sm:$0xff]  }
  0x3c   : > { %v1421_v51 = vld [vmem:[%s1699_s30 + $0x8c] ss:$16 sps:$4 sm:$0xff]   ;;  %v1423_v52 = vld [vmem:[%s1699_s30 + $0x80] ss:$16 sps:$4 sm:$0xff]   ;;  %v1424_v53 = vld [vmem:[%s1699_s30 + $0x88] ss:$16 sps:$4 sm:$0xff]  }
  0x3d   : > { %583 = vmatpush1.bf16.msra.mxu0 %v1405_v40  ;;  %624 = vmatpush1.bf16.msra.mxu1 %v1406_v41  ;;  %v1425_v54 = vld [vmem:[%s1699_s30 + $0xa4] ss:$16 sps:$4 sm:$0xff]   ;;  %v1427_v55 = vld [vmem:[%s1699_s30 + $0xac] ss:$16 sps:$4 sm:$0xff]   ;;  %v1429_v56 = vld [vmem:[%s1699_s30 + $0xa0] ss:$16 sps:$4 sm:$0xff]  }
  0x3e   : > { %584 = vmatprep.subr.bf16.mxu0 %v1407_v42  ;;  %625 = vmatprep.subr.bf16.mxu1 %v1409_v43  ;;  %v1430_v57 = vld [vmem:[%s1699_s30 + $0xa8] ss:$16 sps:$4 sm:$0xff]   ;;  %v1431_v58 = vld [vmem:[%s1699_s30 + $0xc4] ss:$16 sps:$4 sm:$0xff]   ;;  %v1433_v59 = vld [vmem:[%s1699_s30 + $0xcc] ss:$16 sps:$4 sm:$0xff]  }
  0x3f   : > { %v1435_v60 = vld [vmem:[%s1699_s30 + $0xc0] ss:$16 sps:$4 sm:$0xff]   ;;  %v1436_v61 = vld [vmem:[%s1699_s30 + $0xc8] ss:$16 sps:$4 sm:$0xff]   ;;  %v1437_v62 = vld [vmem:[%s1699_s30 + $0xe4] ss:$16 sps:$4 sm:$0xff]  }
  0x40   : > { %v1439_v63 = vld [vmem:[%s1699_s30 + $0xec] ss:$16 sps:$4 sm:$0xff]   ;;  %v1441_v0 = vld [vmem:[%s1699_s30 + $0xe0] ss:$16 sps:$4 sm:$0xff]   ;;  %v1442_v1 = vld [vmem:[%s1699_s30 + $0xe8] ss:$16 sps:$4 sm:$0xff]  }
  0x41   : > { %585 = vmatpush1.bf16.msra.mxu0 %v1411_v44  ;;  %626 = vmatpush1.bf16.msra.mxu1 %v1412_v45  ;;  %v387_v2 = vld [vmem:[%s1826_s0] sm:$0xf]  ;;  %v1447_v7 = vld [vmem:[%s1697_s29 + $0x48] sm:$0xff]   ;;  %v1451_v11 = vld [vmem:[%s1697_s29 + $0x50] sm:$0xff]  }
  0x42   : > { %586 = vmatprep.subr.bf16.mxu0 %v1413_v46  ;;  %627 = vmatprep.subr.bf16.mxu1 %v1415_v47  ;;  %v1443_v3 = vld [vmem:[%s1697_s29 + $0x40] sm:$0xff]   ;;  %v1448_v8 = vld [vmem:[%s1697_s29 + $0xc8] sm:$0xff]   ;;  %v1452_v12 = vld [vmem:[%s1697_s29 + $0xd0] sm:$0xff]  }
  0x43   : > { %v1444_v4 = vld [vmem:[%s1697_s29 + $0xc0] sm:$0xff]   ;;  %v1449_v9 = vld [vmem:[%s1697_s29 + $0x8] sm:$0xff]   ;;  %v1453_v13 = vld [vmem:[%s1697_s29 + $0x10] sm:$0xff]  }
  0x44   : > { %v1445_v5 = vld [vmem:[%s1697_s29] sm:$0xff]   ;;  %v1450_v10 = vld [vmem:[%s1697_s29 + $0x88] sm:$0xff]   ;;  %v1454_v14 = vld [vmem:[%s1697_s29 + $0x90] sm:$0xff]  }
  0x45   : > { %587 = vmatpush1.bf16.msra.mxu0 %v1417_v48  ;;  %628 = vmatpush1.bf16.msra.mxu1 %v1418_v49  ;;  %v1446_v6 = vld [vmem:[%s1697_s29 + $0x80] sm:$0xff]   ;;  %v1455_v15 = vld [vmem:[%s1697_s29 + $0x58] sm:$0xff]   ;;  %v1463_v23 = vld [vmem:[%s1697_s29 + $0x68] sm:$0xff]  }
  0x46   : > { %588 = vmatprep.subr.bf16.mxu0 %v1419_v50  ;;  %629 = vmatprep.subr.bf16.mxu1 %v1421_v51  ;;  %v1456_v16 = vld [vmem:[%s1697_s29 + $0xd8] sm:$0xff]   ;;  %v1459_v19 = vld [vmem:[%s1697_s29 + $0x60] sm:$0xff]   ;;  %v1464_v24 = vld [vmem:[%s1697_s29 + $0xe8] sm:$0xff]  }
  0x47   : > { %v1457_v17 = vld [vmem:[%s1697_s29 + $0x18] sm:$0xff]   ;;  %v1460_v20 = vld [vmem:[%s1697_s29 + $0xe0] sm:$0xff]   ;;  %v1465_v25 = vld [vmem:[%s1697_s29 + $0x28] sm:$0xff]  }
  0x48   : > { %v1458_v18 = vld [vmem:[%s1697_s29 + $0x98] sm:$0xff]   ;;  %v1461_v21 = vld [vmem:[%s1697_s29 + $0x20] sm:$0xff]   ;;  %v1466_v26 = vld [vmem:[%s1697_s29 + $0xa8] sm:$0xff]  }
  0x49   : > { %589 = vmatpush1.bf16.msra.mxu0 %v1423_v52  ;;  %630 = vmatpush1.bf16.msra.mxu1 %v1424_v53  ;;  %v1462_v22 = vld [vmem:[%s1697_s29 + $0xa0] sm:$0xff]   ;;  %v1467_v27 = vld [vmem:[%s1697_s29 + $0x70] sm:$0xff]   ;;  %v1471_v31 = vld [vmem:[%s1697_s29 + $0x78] sm:$0xff]  }
  0x4a   : > { %590 = vmatprep.subr.bf16.mxu0 %v1425_v54  ;;  %631 = vmatprep.subr.bf16.mxu1 %v1427_v55  ;;  %v1468_v28 = vld [vmem:[%s1697_s29 + $0xf0] sm:$0xff]   ;;  %v1472_v32 = vld [vmem:[%s1697_s29 + $0xf8] sm:$0xff]  }
  0x4b   : > { %v1469_v29 = vld [vmem:[%s1697_s29 + $0x30] sm:$0xff]   ;;  %v1473_v33 = vld [vmem:[%s1697_s29 + $0x38] sm:$0xff]  }
  0x4c   : > { %v1470_v30 = vld [vmem:[%s1697_s29 + $0xb0] sm:$0xff]   ;;  %v1474_v34 = vld [vmem:[%s1697_s29 + $0xb8] sm:$0xff]  }
  0x4d   : > { %591 = vmatpush1.bf16.msra.mxu0 %v1429_v56  ;;  %632 = vmatpush1.bf16.msra.mxu1 %v1430_v57 }
  0x4e   : > { %592 = vmatprep.subr.bf16.mxu0 %v1431_v58  ;;  %633 = vmatprep.subr.bf16.mxu1 %v1433_v59 }
  0x51   : > { %593 = vmatpush1.bf16.msra.mxu0 %v1435_v60  ;;  %634 = vmatpush1.bf16.msra.mxu1 %v1436_v61 }
  0x52   : > { %594 = vmatprep.subr.bf16.mxu0 %v1437_v62  ;;  %635 = vmatprep.subr.bf16.mxu1 %v1439_v63 }
  0x55   : > { %595 = vmatpush1.bf16.msra.mxu0 %v1441_v0  ;;  %636 = vmatpush1.bf16.msra.mxu1 %v1442_v1 }
  0x56   : > { %1318 = vmatprep.subr.bf16.mxu0 %v1443_v3  ;;  %1340 = vmatprep.subr.bf16.mxu1 %v1444_v4 }
  0x58   : > { %613 = vmatmul.mubr.bf16.vlgmr.msra.gmra.mrb[0].mxu0 %v387_v2  ;;  %654 = vmatmul.mubr.bf16.vlgmr.msra.gmra.mrb[0].mxu1 %v387_v2 }
  0x59   : > { %1319 = vmatpush3.bf16.msra.mxu0 %v1445_v5  ;;  %1341 = vmatpush3.bf16.msra.mxu1 %v1446_v6 }
  0x5a   : > { %1320 = vmatprep.subr.bf16.mxu0 %v1447_v7  ;;  %1342 = vmatprep.subr.bf16.mxu1 %v1448_v8 }
  0x5d   : > { %1321 = vmatpush3.bf16.msra.mxu0 %v1449_v9  ;;  %1343 = vmatpush3.bf16.msra.mxu1 %v1450_v10 }
  0x5e   : > { %1322 = vmatprep.subr.bf16.mxu0 %v1451_v11  ;;  %1344 = vmatprep.subr.bf16.mxu1 %v1452_v12 }
  0x61   : > { %1323 = vmatpush3.bf16.msra.mxu0 %v1453_v13  ;;  %1345 = vmatpush3.bf16.msra.mxu1 %v1454_v14 }
  0x62   : > { %1324 = vmatprep.subr.bf16.mxu0 %v1455_v15  ;;  %1346 = vmatprep.subr.bf16.mxu1 %v1456_v16 }
  0x65   : > { %1325 = vmatpush3.bf16.msra.mxu0 %v1457_v17  ;;  %1347 = vmatpush3.bf16.msra.mxu1 %v1458_v18 }
  0x66   : > { %1326 = vmatprep.subr.bf16.mxu0 %v1459_v19  ;;  %1348 = vmatprep.subr.bf16.mxu1 %v1460_v20 }
  0x69   : > { %1327 = vmatpush3.bf16.msra.mxu0 %v1461_v21  ;;  %1349 = vmatpush3.bf16.msra.mxu1 %v1462_v22 }
  0x6a   : > { %1328 = vmatprep.subr.bf16.mxu0 %v1463_v23  ;;  %1350 = vmatprep.subr.bf16.mxu1 %v1464_v24 }
  0x6d   : > { %1329 = vmatpush3.bf16.msra.mxu0 %v1465_v25  ;;  %1351 = vmatpush3.bf16.msra.mxu1 %v1466_v26 }
  0x6e   : > { %1330 = vmatprep.subr.bf16.mxu0 %v1467_v27  ;;  %1352 = vmatprep.subr.bf16.mxu1 %v1468_v28 }
  0x71   : > { %1331 = vmatpush3.bf16.msra.mxu0 %v1469_v29  ;;  %1353 = vmatpush3.bf16.msra.mxu1 %v1470_v30 }
  0x72   : > { %1332 = vmatprep.subr.bf16.mxu0 %v1471_v31  ;;  %1354 = vmatprep.subr.bf16.mxu1 %v1472_v32 }
  0x75   : > { %1333 = vmatpush3.bf16.msra.mxu0 %v1473_v33  ;;  %1355 = vmatpush3.bf16.msra.mxu1 %v1474_v34 }
 0x12b   : > { %v614_v35 = vpop.f32.mrb[0].mxu0  ;;  %v655_v36 = vpop.f32.mrb[0].mxu1 }
 0x12c   : > { %v662_v37 = vrot.slane %v614_v35, 4  ;;  %v674_v38 = vrot.slane %v655_v36, 4  ;;  %v616_v39 = vpop.f32.mrb[1].mxu0  ;;  %v657_v40 = vpop.f32.mrb[1].mxu1 }
 0x12d   : > { %v668_v41 = vrot.slane %v616_v39, 4  ;;  %v680_v42 = vrot.slane %v657_v40, 4  ;;  %v618_v43 = vpop.f32.mrb[2].mxu0  ;;  %v659_v44 = vpop.f32.mrb[2].mxu1 }
 0x12e   : > { %v663_v45 = vadd.f32 %v662_v37, %v614_v35  ;;  %v675_v46 = vadd.f32 %v674_v38, %v655_v36  ;;  %v619_v47 = vpop.f32.mrb[3].mxu0  ;;  %v660_v48 = vpop.f32.mrb[3].mxu1 }
 0x12f   : > { %v669_v49 = vadd.f32 %v668_v41, %v616_v39  ;;  %v681_v50 = vadd.f32 %v680_v42, %v657_v40  ;;  %v741_v41 = vlaneseq }
 0x130   : > { %v664_v51 = vrot.slane %v663_v45, 2  ;;  %v676_v52 = vrot.slane %v675_v46, 2 }
 0x131   : > { %v670_v53 = vrot.slane %v669_v49, 2  ;;  %v682_v54 = vrot.slane %v681_v50, 2  ;;  %v742_v48 = vshrl.u32 %v741_v41, 7 }
 0x132   : > { %v665_v55 = vadd.f32 %v664_v51, %v663_v45  ;;  %v677_v56 = vadd.f32 %v676_v52, %v675_v46 }
 0x133   : > { %v671_v57 = vadd.f32 %v670_v53, %v669_v49  ;;  %v683_v58 = vadd.f32 %v682_v54, %v681_v50  ;;  %v743_v49 = vsub.s32 0, %v742_v48  ;;  %v739_v50 = vld [vmem:[%s368_s18] sm:$0xf]  ;;  %v751_v51 = vsub.s32 2, %v742_v48 }
 0x134   : > { %v666_v59 = vrot.slane %v665_v55, 1  ;;  %v678_v60 = vrot.slane %v677_v56, 1  ;;  %v747_v52 = vsub.s32 1, %v742_v48  ;;  %v765_v53 = vld [vmem:[%s373_s23] sm:$0xf]  ;;  %v755_v54 = vsub.s32 3, %v742_v48 }
 0x135   : > { %v672_v61 = vrot.slane %v671_v57, 1  ;;  %v684_v62 = vrot.slane %v683_v58, 1 }
 0x136   : > { %v667_v63 = vadd.f32 %v666_v59, %v665_v55  ;;  %v679_v0 = vadd.f32 %v678_v60, %v677_v56  ;;  %v744_v55 = vrot.slane %v739_v50, %v743_v49  ;;  %v748_v60 = vrot.slane %v739_v50, %v747_v52 }
 0x137   : > { %v673_v1 = vadd.f32 %v672_v61, %v671_v57  ;;  %v685_v2 = vadd.f32 %v684_v62, %v683_v58  ;;  %v752_v57 = vrot.slane %v739_v50, %v751_v51  ;;  %v770_v61 = vrot.slane %v765_v53, %v743_v49 }
 0x138   : > { %v687_v3 = vmul.f32 0.125, %v667_v63  ;;  %v689_v4 = vmul.f32 0.125, %v679_v0  ;;  %v756_v0 = vrot.slane %v739_v50, %v755_v54 }
 0x139   : > { %v688_v5 = vmul.f32 0.125, %v673_v1  ;;  %v690_v6 = vmul.f32 0.125, %v685_v2  ;;  %v778_v1 = vrot.slane %v765_v53, %v751_v51 }
 0x13a   : > { %v691_v7 = vsub.f32 %v614_v35, %v687_v3  ;;  %v693_v8 = vsub.f32 %v655_v36, %v689_v4 }
 0x13b   : > { %v1769_v9 = vsub.f32 %v616_v39, %v688_v5  ;;  %v1771_v10 = vsub.f32 %v657_v40, %v690_v6  ;;  %v774_v5 = vrot.slane %v765_v53, %v747_v52 }
 0x13c   : > { %v695_v11 = vmul.f32 %v691_v7, %v691_v7  ;;  %v697_v12 = vmul.f32 %v693_v8, %v693_v8 }
 0x13d   : > { %v696_v13 = vmul.f32 %v1769_v9, %v1769_v9  ;;  %v698_v14 = vmul.f32 %v1771_v10, %v1771_v10 }
 0x13e   : > { %v699_v15 = vrot.slane %v695_v11, 4  ;;  %v711_v16 = vrot.slane %v697_v12, 4 }
 0x13f   : > { %v705_v17 = vrot.slane %v696_v13, 4  ;;  %v717_v18 = vrot.slane %v698_v14, 4 }
 0x140   : > { %v700_v19 = vadd.f32 %v699_v15, %v695_v11  ;;  %v712_v20 = vadd.f32 %v711_v16, %v697_v12  ;;  %v782_v12 = vrot.slane %v765_v53, %v755_v54 }
 0x141   : > { %v706_v21 = vadd.f32 %v705_v17, %v696_v13  ;;  %v718_v22 = vadd.f32 %v717_v18, %v698_v14 }
 0x142   : > { %v701_v23 = vrot.slane %v700_v19, 2  ;;  %v713_v24 = vrot.slane %v712_v20, 2 }
 0x143   : > { %v707_v25 = vrot.slane %v706_v21, 2  ;;  %v719_v26 = vrot.slane %v718_v22, 2 }
 0x144   : > { %v702_v27 = vadd.f32 %v701_v23, %v700_v19  ;;  %v714_v28 = vadd.f32 %v713_v24, %v712_v20 }
 0x145   : > { %v708_v29 = vadd.f32 %v707_v25, %v706_v21  ;;  %v720_v30 = vadd.f32 %v719_v26, %v718_v22 }
 0x146   : > { %v703_v31 = vrot.slane %v702_v27, 1  ;;  %v715_v32 = vrot.slane %v714_v28, 1 }
 0x147   : > { %v709_v33 = vrot.slane %v708_v29, 1  ;;  %v721_v34 = vrot.slane %v720_v30, 1 }
 0x148   : > { %v704_v35 = vadd.f32 %v703_v31, %v702_v27  ;;  %v716_v36 = vadd.f32 %v715_v32, %v714_v28  ;;  %v795_v32 = vld [vmem:[#allocation3] sm:$0xff] }
 0x149   : > { %v710_v37 = vadd.f32 %v709_v33, %v708_v29  ;;  %v722_v38 = vadd.f32 %v721_v34, %v720_v30 }
 0x14a   : > { %v723_v39 = vmul.f32 0.125, %v704_v35  ;;  %v725_v40 = vmul.f32 0.125, %v716_v36 }
 0x14b   : > { %v724_v42 = vmul.f32 0.125, %v710_v37  ;;  %v726_v43 = vmul.f32 0.125, %v722_v38  ;;  %v1312_v37 = vld [vmem:[%s1831_s5] ss:$0 sm:$0xff] (!%p1311_p11) }
 0x14c   : > { %v727_v44 = vadd.f32 1e-05, %v723_v39  ;;  %v729_v45 = vadd.f32 1e-05, %v725_v40 }
 0x14d   : > { %v728_v46 = vadd.f32 1e-05, %v724_v42  ;;  %v730_v47 = vadd.f32 1e-05, %v726_v43 }
 0x14e   : > { %1475 = vrsqrt.f32 %v727_v44 }
 0x14f   : > { %1477 = vrsqrt.f32 %v729_v45 }
 0x150   : > { %1479 = vrsqrt.f32 %v728_v46 }
 0x151   : > { %1481 = vrsqrt.f32 %v730_v47 }
 0x158   : > { %v1476_v56 = vpop.eup %1475 }
 0x159   : > { %v1478_v58 = vpop.eup %1477  ;;  %v735_v59 = vmul.f32 %v1476_v56, %v691_v7 }
 0x15a   : > { %v1480_v62 = vpop.eup %1479  ;;  %v737_v63 = vmul.f32 %v1478_v58, %v693_v8 }
 0x15b   : > { %v1482_v2 = vpop.eup %1481  ;;  %v761_v3 = vmul.f32 %v744_v55, %v735_v59  ;;  %v736_v4 = vmul.f32 %v1480_v62, %v1769_v9 }
 0x15c   : > { %v763_v6 = vmul.f32 %v752_v57, %v737_v63  ;;  %v738_v11 = vmul.f32 %v1482_v2, %v1771_v10 }
 0x15d   : > { %v762_v13 = vmul.f32 %v748_v60, %v736_v4  ;;  %v787_v14 = vadd.f32 %v770_v61, %v761_v3 }
 0x15e   : > { %v764_v15 = vmul.f32 %v756_v0, %v738_v11  ;;  %v789_v16 = vadd.f32 %v778_v1, %v763_v6 }
 0x15f   : > { %v788_v7 = vadd.f32 %v774_v5, %v762_v13  ;;  %v791_v18 = vmax.f32 %v787_v14, 0.0 }
 0x160   : > { %v790_v17 = vadd.f32 %v782_v12, %v764_v15  ;;  %v793_v8 = vmax.f32 %v789_v16, 0.0 }
 0x161   : > { %v792_v19 = vmax.f32 %v788_v7, 0.0  ;;  %v796_v23 = vpack.c.bf16 %v791_v18, %v791_v18 }
 0x162   : > { %v794_v20 = vmax.f32 %v790_v17, 0.0  ;;  %v798_v9 = vpack.c.bf16 %v793_v8, %v793_v8 }
 0x163   : > { %v797_v21 = vpack.c.bf16 %v792_v19, %v792_v19 }
 0x164   : > { %v799_v22 = vpack.c.bf16 %v794_v20, %v794_v20 }
 0x165   : > { %1088 = vmatprep.mubr.bf16.mxu0 %v797_v21 }
 0x166   : > { %1128 = vmatprep.mubr.bf16.mxu1 %v799_v22  ;;  %1089 = vmatmul.mubr.bf16.vlgmr.msra.gmra.mrb[4].mxu0 %v796_v23 }
 0x167   : > { %1129 = vmatmul.mubr.bf16.vlgmr.msra.gmra.mrb[4].mxu1 %v798_v9 }
 0x239   : > { %v1334_v10 = vpop.f32.mrb[4].mxu0 }
 0x23a   : > { %v1356_v24 = vpop.f32.mrb[4].mxu1  ;;  %v1335_v25 = vpop.f32.mrb[5].mxu0 }
 0x23b   : > { %v1336_v26 = vadd.f32 %v1335_v25, %v1334_v10  ;;  %v1357_v27 = vpop.f32.mrb[5].mxu1  ;;  %v1337_v28 = vpop.f32.mrb[6].mxu0 }
 0x23c   : > { %v1358_v29 = vadd.f32 %v1357_v27, %v1356_v24  ;;  %v1359_v30 = vpop.f32.mrb[6].mxu1  ;;  %v1338_v31 = vpop.f32.mrb[7].mxu0  ;;  %1141 = sbr.rel (%p1311_p11) target bundleno = 589 (0x24d), region = 75 }
 0x23d   : > { %v1360_v33 = vpop.f32.mrb[7].mxu1 }
 0x23e   : > { %v1131_v34 = vadd.f32 %v1358_v29, %v1336_v26 }
 0x240   : > { %v1136_v35 = vadd.f32 %v1131_v34, %v795_v32 }
 0x242   : > { %1137 = vst [vmem:[#allocation3] sm:$0xff] %v1136_v35 }
 0x249   : > { %v1142_v36 = vld [vmem:[#allocation3] sm:$0xff] }
 0x24a   : > { %v1150_v38 = vadd.f32 %v1312_v37, %v1142_v36 }
 0x24c   : > { %1151 = vst [vmem:[#allocation3] sm:$0xff] %v1150_v38 }
 0x24d PF: > { %p1366_p12 = scmp.eq.s32.totalorder %s1591_s24, 1  ;;  %s1539_s15 = smov [#allocation3]  }
 0x24e   : > { %s1159_s16 = sshll.u32 %s1539_s15, 4  ;;  %s1160_s16 = int_to_ptr.vmem [resolvable:$true] %s1159_s16 }
 0x24f   : > { %s1483_s17 = scalar_lea.vmem %s1160_s16, 128  ;;  %p1490_p2 = scmp.lt.s32.totalorder %s1160_s16, %s1160_s16 }
 0x250   : > { %p1484_p13 = scmp.ne.s32.totalorder %s1160_s16, %s1483_s17  ;;  %p1491_p3 = scmp.lt.s32.totalorder %s1483_s17, %s1483_s17 }
 0x252   : > { %p1485_p0 = pnand %p1484_p13, %p1366_p12  ;;  %p1492_p4 = por %p1491_p3, %p1490_p2 }
 0x254   : > { %p1486_p1 = pneg %p1485_p0 }
 0x256   : > { %p1493_p5 = pnand %p1492_p4, %p1486_p1 }
 0x258   : > { %1496 = shalt.err (!%p1493_p5)
}
 0x259   : > { %s1497_s20 = scalar_lea.hbm %s1832_s6, 128 }
 0x25a   : > { %p1498_p6 = scmp.ne.s32.totalorder %s1832_s6, %s1497_s20  ;;  %p1503_p9 = scmp.lt.u32.totalorder %s1497_s20, %s1832_s6 }
 0x25c   : > { %p1499_p7 = pnand %p1498_p6, %p1366_p12 }
 0x25e   : > { %p1500_p8 = pneg %p1499_p7 }
 0x260   : > { %p1505_p10 = pnand %p1503_p9, %p1500_p8 }
 0x262   : > { %1508 = shalt.err (!%p1505_p10)
}
 0x263   : > { %1363 = dma.vmem_to_hbm [thread:$0]  (%p1366_p12), %s1160_s16, 128, %s1832_s6, [#allocation4]  }
 0x264   : > { %1522 = dma.done.wait (%p1366_p12), [#allocation4], 128  }
 0x265   : > { %1524 = vsyncadd (%p1366_p12), [#allocation4], 4294967168 }
 0x266 PF: > { %p14_p11 = scmp.ge.s32.totalorder %s1594_s25, 4   ;;  %s1833_s21 = smov %s1531_s22 }
 0x267   : > { %s1834_s22 = smov %s1603_s28  ;;  %s1835_s23 = smov %s1594_s25 }
 0x268   :  { %16 = sbr.rel (!%p14_p11) target bundleno = 2 (0x2), region = 116 }
 0x26f   :  { %1172 = vsyncpa [#allocation4], 1 }
 0x270   :  { %1174 = vsyncpa [#allocation4 + $0x1], 1 }

</bundles_post_ra>
